<compile_context>
chip_gen: v7x
topology: tpu7x:2x2x1
jax: 0.10.0
libtpu: 0.0.40
codegen_flags: <defaults>
</compile_context>

<pallas_src>
import jax
import jax.numpy as jnp
import numpy as np
from jax import lax
from jax.experimental import pallas as pl
from jax.experimental.pallas import tpu as pltpu

LANE = 128
SUBLANE = 8


def _round_up(x, m):
    return (x + m - 1) // m * m


# ----------------------------------------------------------------------------
# Fused kernel: all L LSTM layers + FC head in a single invocation.
# ----------------------------------------------------------------------------
def _make_fused_rnn_kernel(T, Bp, H, W, F, L, unroll):
    """Layouts (all f32):
      x_ref   : (T*Bp, F)  time-major, batch-flattened, zero-padded input slab
      wih_ref : (L, F, W)  input->gates weights, gates packed densely [i|f|g|o]
      whh_ref : (L, W, W)  hidden->gates weights (rows H:W are zero)
      b_ref   : (L, 1, W)  b_ih + b_hh
      h0_ref  : (L, Bp, W) initial hidden state (valid region [:B, :H])
      c0_ref  : (L, Bp, W) initial cell state
      fcw_ref : (W, Cp)    FC weight^T (rows H:W zero)
      fcb_ref : (1, Cp)
      out_ref : (Bp, Cp)
      ih_sc   : (T*Bp, W)  hoisted per-layer input projection (scratch)
      hseq_sc : (T*Bp, W)  inter-layer hidden-state slab (scratch, stays in VMEM)
    """

    def kernel(x_ref, wih_ref, whh_ref, b_ref, h0_ref, c0_ref,
               fcw_ref, fcb_ref, out_ref, ih_sc, hseq_sc):
        # Layer/step-invariant lane constants, hoisted once (JAX won't CSE them).
        lane = lax.broadcasted_iota(jnp.int32, (Bp, W), 1)
        is_g = (lane >= 2 * H) & (lane < 3 * H)          # tanh ("g") gate lanes
        pre = jnp.where(is_g, 1.0, 0.5).astype(jnp.float32)

        def run_layer(l):
            # Hoisted input projection: one big MXU matmul for the whole sequence.
            wih_l = wih_ref[l]                            # (F, W)
            if F != W and l > 0:
                wih_l = wih_l[:W, :]                      # layers >0 contract over W
            src = x_ref[...] if l == 0 else hseq_sc[...]
            ih_sc[...] = (jnp.dot(src, wih_l,
                                  preferred_element_type=jnp.float32) + b_ref[l])

            whh_l = whh_ref[l]                            # held across all T steps
            store_seq = (l != L - 1)                      # last layer only needs h_T

            def step(t, carry):
                h, c = carry                              # vreg carries, no VMEM r/w
                row = pl.multiple_of(t * Bp, Bp)          # sublane-aligned offset
                gates = ih_sc[pl.ds(row, Bp), :] + jnp.dot(
                    h, whh_l, preferred_element_type=jnp.float32)
                # One EUP push for all four gates: sigmoid(x) = 0.5*(tanh(x/2)+1).
                a = jnp.tanh(gates * pre)
                a = jnp.where(is_g, a, 0.5 * (a + 1.0))
                # Align f/g/o gate lanes onto lanes [0:H) with XLU rotations.
                f_al = pltpu.roll(a, shift=W - H, axis=1)
                g_al = pltpu.roll(a, shift=W - 2 * H, axis=1)
                o_al = pltpu.roll(a, shift=W - 3 * H, axis=1)
                c_new = f_al * c + a * g_al               # "i" gate is `a` itself
                h_new = o_al * jnp.tanh(c_new)
                if store_seq:                             # static (trace-time) branch
                    hseq_sc[pl.ds(row, Bp), :] = h_new
                return h_new, c_new

            h_fin, _ = lax.fori_loop(0, T, step, (h0_ref[l], c0_ref[l]),
                                     unroll=unroll)
            return h_fin

        h_last = run_layer(0)
        for l in range(1, L):            # L is tiny & static
            h_last = run_layer(l)

        # Fused FC head: h_T never leaves VMEM/vregs.
        out_ref[...] = (jnp.dot(h_last, fcw_ref[...],
                                preferred_element_type=jnp.float32) + fcb_ref[...])

    return kernel


# ----------------------------------------------------------------------------
# Forward wrapper
# ----------------------------------------------------------------------------
def rnn_forward(x, packed, h0, c0):
    """x: (B, T, D) batch_first; h0, c0: (L, B, H). Returns (B, num_classes)."""
    B, T, D = x.shape
    L, H, C = packed["L"], packed["H"], packed["C"]
    Bp, W, F, Cp = packed["Bp"], packed["W"], packed["F"], packed["Cp"]

    # Time-major, padded to the (8, 128) granule, flattened to a dense 2-D slab.
    x_tm = jnp.transpose(x, (1, 0, 2))                          # (T, B, D)
    x_p = jnp.pad(x_tm, ((0, 0), (0, Bp - B), (0, F - D)))      # (T, Bp, F)
    x2d = x_p.reshape(T * Bp, F)

    h0_p = jnp.pad(h0, ((0, 0), (0, Bp - B), (0, W - H)))       # (L, Bp, W)
    c0_p = jnp.pad(c0, ((0, 0), (0, Bp - B), (0, W - H)))

    unroll = True if T <= 32 else 8
    kernel = _make_fused_rnn_kernel(T, Bp, H, W, F, L, unroll)

    operands = (x2d, packed["wih"], packed["whh"], packed["b"],
                h0_p, c0_p, packed["fc_w_t"], packed["fc_b"])
    scratch = [pltpu.VMEM((T * Bp, W), jnp.float32),   # hoisted ih projection
               pltpu.VMEM((T * Bp, W), jnp.float32)]   # inter-layer hidden slab

    op_bytes = sum(int(np.prod(o.shape)) * 4 for o in operands)
    scr_bytes = 2 * T * Bp * W * 4
    vmem_limit = int(min(48 << 20, max(16 << 20, 2 * (op_bytes + scr_bytes))))
    # TODO(synk): at production T*B*H this full-sequence-resident design should be
    # chunked over T (emit_pipeline) to respect v7x's 64 MiB VMEM.

    out_p = pl.pallas_call(
        kernel,
        out_shape=jax.ShapeDtypeStruct((Bp, Cp), jnp.float32),
        scratch_shapes=scratch,
        compiler_params=pltpu.CompilerParams(vmem_limit_bytes=vmem_limit),
    )(*operands)
    return out_p[:B, :C]


# ----------------------------------------------------------------------------
# Pure-JAX reference (unpadded, PyTorch layout) for the correctness check
# ----------------------------------------------------------------------------
def rnn_forward_ref(x, params, h0, c0):
    B, T, D = x.shape
    H = params["H"]
    layer_in = x
    for l in range(params["L"]):
        w_ih, w_hh, b = params["lstm"][l]
        h = h0[l]
        c = c0[l]
        outs = []
        for t in range(T):
            gates = layer_in[:, t, :] @ w_ih.T + h @ w_hh.T + b
            i_g = jax.nn.sigmoid(gates[:, 0 * H:1 * H])
            f_g = jax.nn.sigmoid(gates[:, 1 * H:2 * H])
            g_g = jnp.tanh(gates[:, 2 * H:3 * H])
            o_g = jax.nn.sigmoid(gates[:, 3 * H:4 * H])
            c = f_g * c + i_g * g_g
            h = o_g * jnp.tanh(c)
            outs.append(h)
        layer_in = jnp.stack(outs, axis=1)
    return layer_in[:, -1, :] @ params["fc_w"].T + params["fc_b"]


# ----------------------------------------------------------------------------
# Parameter init (PyTorch-style U(-1/sqrt(H), 1/sqrt(H))) + kernel packing
# ----------------------------------------------------------------------------
def init_params(key, input_size, hidden_size, num_layers, num_classes):
    H = hidden_size
    bound = 1.0 / np.sqrt(H)
    lstm = []
    for l in range(num_layers):
        d_in = input_size if l == 0 else H
        key, k1, k2, k3, k4 = jax.random.split(key, 5)
        w_ih = jax.random.uniform(k1, (4 * H, d_in), jnp.float32, -bound, bound)
        w_hh = jax.random.uniform(k2, (4 * H, H), jnp.float32, -bound, bound)
        b_ih = jax.random.uniform(k3, (4 * H,), jnp.float32, -bound, bound)
        b_hh = jax.random.uniform(k4, (4 * H,), jnp.float32, -bound, bound)
        lstm.append((w_ih, w_hh, b_ih + b_hh))
    key, k5, k6 = jax.random.split(key, 3)
    fc_w = jax.random.uniform(k5, (num_classes, H), jnp.float32, -bound, bound)
    fc_b = jax.random.uniform(k6, (num_classes,), jnp.float32, -bound, bound)
    params = {"lstm": lstm, "fc_w": fc_w, "fc_b": fc_b,
              "H": H, "C": num_classes, "D": input_size, "L": num_layers}
    return params, key


def pack_params(params, batch_size):
    """Transpose / pad weights to the dense-gate, MXU-friendly layout."""
    H, C, D, L = params["H"], params["C"], params["D"], params["L"]
    W = _round_up(4 * H, LANE)      # dense gate lanes [i|f|g|o] in [0:4H)
    Dp = _round_up(D, LANE)
    F = max(Dp, W)                  # layer-0 feature (contraction) width
    Cp = _round_up(C, LANE)
    Bp = _round_up(batch_size, SUBLANE)

    wih = np.zeros((L, F, W), np.float32)
    whh = np.zeros((L, W, W), np.float32)
    b = np.zeros((L, 1, W), np.float32)
    for l in range(L):
        w_ih, w_hh, bias = params["lstm"][l]          # (4H, d_in), (4H, H), (4H,)
        d_in = D if l == 0 else H
        wih[l, :d_in, :4 * H] = np.asarray(w_ih).T    # gate order [i,f,g,o] kept
        whh[l, :H, :4 * H] = np.asarray(w_hh).T
        b[l, 0, :4 * H] = np.asarray(bias)

    fc_w_t = np.zeros((W, Cp), np.float32)
    fc_w_t[:H, :C] = np.asarray(params["fc_w"]).T
    fc_b = np.zeros((1, Cp), np.float32)
    fc_b[0, :C] = np.asarray(params["fc_b"])

    return {"wih": jnp.asarray(wih), "whh": jnp.asarray(whh), "b": jnp.asarray(b),
            "fc_w_t": jnp.asarray(fc_w_t), "fc_b": jnp.asarray(fc_b),
            "H": H, "C": C, "D": D, "L": L,
            "W": W, "F": F, "Cp": Cp, "Bp": Bp}


if __name__ == "__main__":
    # Small shapes consistent with the module's forward
    B, T, D = 4, 8, 16          # batch, seq_len, input_size
    H, L, C = 32, 2, 6          # hidden_size, num_layers, num_classes

    key = jax.random.PRNGKey(0)
    params, key = init_params(key, D, H, L, C)
    packed = pack_params(params, batch_size=B)

    key, kx, kh, kc = jax.random.split(key, 4)
    x = jax.random.normal(kx, (B, T, D), jnp.float32)
    # torch.rand -> U[0, 1) initial states (deterministic here)
    h0 = jax.random.uniform(kh, (L, B, H), jnp.float32)
    c0 = jax.random.uniform(kc, (L, B, H), jnp.float32)

    out = rnn_forward(x, packed, h0, c0)
    out = jax.block_until_ready(out)

    ref = rnn_forward_ref(x, params, h0, c0)
    np.testing.assert_allclose(np.asarray(out), np.asarray(ref),
                               rtol=1e-4, atol=1e-4)

    assert out.shape == (B, C)
    print("KERNEL_OK")
</pallas_src>

<mosaic_0001>
module attributes {stable_mosaic.version = 11 : i64} {
  func.func @kernel(%arg0: memref<64x128xf32, #tpu.memory_space<vmem>>, %arg1: memref<2x128x128xf32, #tpu.memory_space<vmem>>, %arg2: memref<2x128x128xf32, #tpu.memory_space<vmem>>, %arg3: memref<2x1x128xf32, #tpu.memory_space<vmem>>, %arg4: memref<2x8x128xf32, #tpu.memory_space<vmem>>, %arg5: memref<2x8x128xf32, #tpu.memory_space<vmem>>, %arg6: memref<128x128xf32, #tpu.memory_space<vmem>>, %arg7: memref<1x128xf32, #tpu.memory_space<vmem>>, %arg8: memref<8x128xf32, #tpu.memory_space<vmem>>, %arg9: memref<64x128xf32, #tpu.memory_space<vmem>>, %arg10: memref<64x128xf32, #tpu.memory_space<vmem>>) attributes {dimension_semantics = [], scalar_prefetch = 0 : i64, scratch_operands = 2 : i64, tpu.core_type = #tpu.core_type<tc>} {
    %0 = tpu.iota {dimensions = array<i32: 1>} : vector<8x128xi32>
    %c64_i32 = arith.constant 64 : i32
    %1 = vector.broadcast %c64_i32 : i32 to vector<8x128xi32>
    %2 = arith.cmpi sge, %0, %1 : vector<8x128xi32>
    %c96_i32 = arith.constant 96 : i32
    %3 = vector.broadcast %c96_i32 : i32 to vector<8x128xi32>
    %4 = arith.cmpi slt, %0, %3 : vector<8x128xi32>
    %5 = arith.andi %2, %4 : vector<8x128xi1>
    %cst = arith.constant 1.000000e+00 : f32
    %cst_0 = arith.constant 5.000000e-01 : f32
    %6 = vector.broadcast %cst : f32 to vector<8x128xf32>
    %7 = vector.broadcast %cst_0 : f32 to vector<8x128xf32>
    %8 = arith.select %5, %6, %7 : vector<8x128xi1>, vector<8x128xf32>
    %c0 = arith.constant 0 : index
    %c0_1 = arith.constant 0 : index
    %c0_2 = arith.constant 0 : index
    %9 = vector.load %arg1[%c0, %c0_1, %c0_2] : memref<2x128x128xf32, #tpu.memory_space<vmem>>, vector<1x128x128xf32>
    %10 = vector.shape_cast %9 : vector<1x128x128xf32> to vector<128x128xf32>
    %c0_3 = arith.constant 0 : index
    %c0_4 = arith.constant 0 : index
    %11 = vector.load %arg0[%c0_3, %c0_4] : memref<64x128xf32, #tpu.memory_space<vmem>>, vector<64x128xf32>
    %cst_5 = arith.constant dense<0.000000e+00> : vector<64x128xf32>
    %12 = tpu.matmul %11, %10, %cst_5 {dimension_numbers = #tpu.dot_dimension_numbers<[1], [0], [0], [1], [0, 0, 1, 1], [], []>} : vector<64x128xf32>, vector<128x128xf32>, vector<64x128xf32> -> vector<64x128xf32>
    %c0_6 = arith.constant 0 : index
    %c0_7 = arith.constant 0 : index
    %c0_8 = arith.constant 0 : index
    %13 = vector.load %arg3[%c0_6, %c0_7, %c0_8] : memref<2x1x128xf32, #tpu.memory_space<vmem>>, vector<1x1x128xf32>
    %14 = vector.shape_cast %13 : vector<1x1x128xf32> to vector<1x128xf32>
    %15 = vector.broadcast %14 : vector<1x128xf32> to vector<64x128xf32>
    %16 = arith.addf %12, %15 : vector<64x128xf32>
    %c0_9 = arith.constant 0 : index
    %c0_10 = arith.constant 0 : index
    %17 = vector.load %arg9[%c0_9, %c0_10] : memref<64x128xf32, #tpu.memory_space<vmem>>, vector<64x128xf32>
    tpu.vector_store %arg9[%c0_9, %c0_10], %16 {strides = array<i32>} : memref<64x128xf32, #tpu.memory_space<vmem>>, vector<64x128xf32>,
    %c0_11 = arith.constant 0 : index
    %c0_12 = arith.constant 0 : index
    %c0_13 = arith.constant 0 : index
    %18 = vector.load %arg2[%c0_11, %c0_12, %c0_13] : memref<2x128x128xf32, #tpu.memory_space<vmem>>, vector<1x128x128xf32>
    %19 = vector.shape_cast %18 : vector<1x128x128xf32> to vector<128x128xf32>
    %c0_14 = arith.constant 0 : index
    %c0_15 = arith.constant 0 : index
    %c0_16 = arith.constant 0 : index
    %20 = vector.load %arg4[%c0_14, %c0_15, %c0_16] : memref<2x8x128xf32, #tpu.memory_space<vmem>>, vector<1x8x128xf32>
    %21 = vector.shape_cast %20 : vector<1x8x128xf32> to vector<8x128xf32>
    %c0_17 = arith.constant 0 : index
    %c0_18 = arith.constant 0 : index
    %c0_19 = arith.constant 0 : index
    %22 = vector.load %arg5[%c0_17, %c0_18, %c0_19] : memref<2x8x128xf32, #tpu.memory_space<vmem>>, vector<1x8x128xf32>
    %23 = vector.shape_cast %22 : vector<1x8x128xf32> to vector<8x128xf32>
    %c0_i32 = arith.constant 0 : i32
    %c8_i32 = arith.constant 8 : i32
    %24 = arith.muli %c0_i32, %c8_i32 : i32
    %25 = tpu.assume_multiple %24, 8 : i32
    %26 = arith.index_cast %25 : i32 to index
    %c0_20 = arith.constant 0 : index
    %27 = vector.load %arg9[%26, %c0_20] : memref<64x128xf32, #tpu.memory_space<vmem>>, vector<8x128xf32>
    %cst_21 = arith.constant dense<0.000000e+00> : vector<8x128xf32>
    %28 = tpu.matmul %21, %19, %cst_21 {dimension_numbers = #tpu.dot_dimension_numbers<[1], [0], [0], [1], [0, 0, 1, 1], [], []>} : vector<8x128xf32>, vector<128x128xf32>, vector<8x128xf32> -> vector<8x128xf32>
    %29 = arith.addf %27, %28 : vector<8x128xf32>
    %30 = arith.mulf %29, %8 : vector<8x128xf32>
    %31 = math.tanh %30 : vector<8x128xf32>
    %cst_22 = arith.constant 1.000000e+00 : f32
    %32 = vector.broadcast %cst_22 : f32 to vector<8x128xf32>
    %33 = arith.addf %31, %32 : vector<8x128xf32>
    %cst_23 = arith.constant 5.000000e-01 : f32
    %34 = vector.broadcast %cst_23 : f32 to vector<8x128xf32>
    %35 = arith.mulf %34, %33 : vector<8x128xf32>
    %36 = arith.select %5, %31, %35 : vector<8x128xi1>, vector<8x128xf32>
    %c96_i32_24 = arith.constant 96 : i32
    %37 = tpu.dynamic_rotate %36 by %c96_i32_24 dim 1 : vector<8x128xf32>, i32 -> vector<8x128xf32>
    %c64_i32_25 = arith.constant 64 : i32
    %38 = tpu.dynamic_rotate %36 by %c64_i32_25 dim 1 : vector<8x128xf32>, i32 -> vector<8x128xf32>
    %c32_i32 = arith.constant 32 : i32
    %39 = tpu.dynamic_rotate %36 by %c32_i32 dim 1 : vector<8x128xf32>, i32 -> vector<8x128xf32>
    %40 = arith.mulf %37, %23 : vector<8x128xf32>
    %41 = arith.mulf %36, %38 : vector<8x128xf32>
    %42 = arith.addf %40, %41 : vector<8x128xf32>
    %43 = math.tanh %42 : vector<8x128xf32>
    %44 = arith.mulf %39, %43 : vector<8x128xf32>
    %45 = arith.index_cast %25 : i32 to index
    %c0_26 = arith.constant 0 : index
    %46 = vector.load %arg10[%45, %c0_26] : memref<64x128xf32, #tpu.memory_space<vmem>>, vector<8x128xf32>
    tpu.vector_store %arg10[%45, %c0_26], %44 {strides = array<i32>} : memref<64x128xf32, #tpu.memory_space<vmem>>, vector<8x128xf32>,
    %c1_i32 = arith.constant 1 : i32
    %c8_i32_27 = arith.constant 8 : i32
    %47 = arith.muli %c1_i32, %c8_i32_27 : i32
    %48 = tpu.assume_multiple %47, 8 : i32
    %49 = arith.index_cast %48 : i32 to index
    %c0_28 = arith.constant 0 : index
    %50 = vector.load %arg9[%49, %c0_28] : memref<64x128xf32, #tpu.memory_space<vmem>>, vector<8x128xf32>
    %cst_29 = arith.constant dense<0.000000e+00> : vector<8x128xf32>
    %51 = tpu.matmul %44, %19, %cst_29 {dimension_numbers = #tpu.dot_dimension_numbers<[1], [0], [0], [1], [0, 0, 1, 1], [], []>} : vector<8x128xf32>, vector<128x128xf32>, vector<8x128xf32> -> vector<8x128xf32>
    %52 = arith.addf %50, %51 : vector<8x128xf32>
    %53 = arith.mulf %52, %8 : vector<8x128xf32>
    %54 = math.tanh %53 : vector<8x128xf32>
    %cst_30 = arith.constant 1.000000e+00 : f32
    %55 = vector.broadcast %cst_30 : f32 to vector<8x128xf32>
    %56 = arith.addf %54, %55 : vector<8x128xf32>
    %cst_31 = arith.constant 5.000000e-01 : f32
    %57 = vector.broadcast %cst_31 : f32 to vector<8x128xf32>
    %58 = arith.mulf %57, %56 : vector<8x128xf32>
    %59 = arith.select %5, %54, %58 : vector<8x128xi1>, vector<8x128xf32>
    %c96_i32_32 = arith.constant 96 : i32
    %60 = tpu.dynamic_rotate %59 by %c96_i32_32 dim 1 : vector<8x128xf32>, i32 -> vector<8x128xf32>
    %c64_i32_33 = arith.constant 64 : i32
    %61 = tpu.dynamic_rotate %59 by %c64_i32_33 dim 1 : vector<8x128xf32>, i32 -> vector<8x128xf32>
    %c32_i32_34 = arith.constant 32 : i32
    %62 = tpu.dynamic_rotate %59 by %c32_i32_34 dim 1 : vector<8x128xf32>, i32 -> vector<8x128xf32>
    %63 = arith.mulf %60, %42 : vector<8x128xf32>
    %64 = arith.mulf %59, %61 : vector<8x128xf32>
    %65 = arith.addf %63, %64 : vector<8x128xf32>
    %66 = math.tanh %65 : vector<8x128xf32>
    %67 = arith.mulf %62, %66 : vector<8x128xf32>
    %68 = arith.index_cast %48 : i32 to index
    %c0_35 = arith.constant 0 : index
    %69 = vector.load %arg10[%68, %c0_35] : memref<64x128xf32, #tpu.memory_space<vmem>>, vector<8x128xf32>
    tpu.vector_store %arg10[%68, %c0_35], %67 {strides = array<i32>} : memref<64x128xf32, #tpu.memory_space<vmem>>, vector<8x128xf32>,
    %c2_i32 = arith.constant 2 : i32
    %c8_i32_36 = arith.constant 8 : i32
    %70 = arith.muli %c2_i32, %c8_i32_36 : i32
    %71 = tpu.assume_multiple %70, 8 : i32
    %72 = arith.index_cast %71 : i32 to index
    %c0_37 = arith.constant 0 : index
    %73 = vector.load %arg9[%72, %c0_37] : memref<64x128xf32, #tpu.memory_space<vmem>>, vector<8x128xf32>
    %cst_38 = arith.constant dense<0.000000e+00> : vector<8x128xf32>
    %74 = tpu.matmul %67, %19, %cst_38 {dimension_numbers = #tpu.dot_dimension_numbers<[1], [0], [0], [1], [0, 0, 1, 1], [], []>} : vector<8x128xf32>, vector<128x128xf32>, vector<8x128xf32> -> vector<8x128xf32>
    %75 = arith.addf %73, %74 : vector<8x128xf32>
    %76 = arith.mulf %75, %8 : vector<8x128xf32>
    %77 = math.tanh %76 : vector<8x128xf32>
    %cst_39 = arith.constant 1.000000e+00 : f32
    %78 = vector.broadcast %cst_39 : f32 to vector<8x128xf32>
    %79 = arith.addf %77, %78 : vector<8x128xf32>
    %cst_40 = arith.constant 5.000000e-01 : f32
    %80 = vector.broadcast %cst_40 : f32 to vector<8x128xf32>
    %81 = arith.mulf %80, %79 : vector<8x128xf32>
    %82 = arith.select %5, %77, %81 : vector<8x128xi1>, vector<8x128xf32>
    %c96_i32_41 = arith.constant 96 : i32
    %83 = tpu.dynamic_rotate %82 by %c96_i32_41 dim 1 : vector<8x128xf32>, i32 -> vector<8x128xf32>
    %c64_i32_42 = arith.constant 64 : i32
    %84 = tpu.dynamic_rotate %82 by %c64_i32_42 dim 1 : vector<8x128xf32>, i32 -> vector<8x128xf32>
    %c32_i32_43 = arith.constant 32 : i32
    %85 = tpu.dynamic_rotate %82 by %c32_i32_43 dim 1 : vector<8x128xf32>, i32 -> vector<8x128xf32>
    %86 = arith.mulf %83, %65 : vector<8x128xf32>
    %87 = arith.mulf %82, %84 : vector<8x128xf32>
    %88 = arith.addf %86, %87 : vector<8x128xf32>
    %89 = math.tanh %88 : vector<8x128xf32>
    %90 = arith.mulf %85, %89 : vector<8x128xf32>
    %91 = arith.index_cast %71 : i32 to index
    %c0_44 = arith.constant 0 : index
    %92 = vector.load %arg10[%91, %c0_44] : memref<64x128xf32, #tpu.memory_space<vmem>>, vector<8x128xf32>
    tpu.vector_store %arg10[%91, %c0_44], %90 {strides = array<i32>} : memref<64x128xf32, #tpu.memory_space<vmem>>, vector<8x128xf32>,
    %c3_i32 = arith.constant 3 : i32
    %c8_i32_45 = arith.constant 8 : i32
    %93 = arith.muli %c3_i32, %c8_i32_45 : i32
    %94 = tpu.assume_multiple %93, 8 : i32
    %95 = arith.index_cast %94 : i32 to index
    %c0_46 = arith.constant 0 : index
    %96 = vector.load %arg9[%95, %c0_46] : memref<64x128xf32, #tpu.memory_space<vmem>>, vector<8x128xf32>
    %cst_47 = arith.constant dense<0.000000e+00> : vector<8x128xf32>
    %97 = tpu.matmul %90, %19, %cst_47 {dimension_numbers = #tpu.dot_dimension_numbers<[1], [0], [0], [1], [0, 0, 1, 1], [], []>} : vector<8x128xf32>, vector<128x128xf32>, vector<8x128xf32> -> vector<8x128xf32>
    %98 = arith.addf %96, %97 : vector<8x128xf32>
    %99 = arith.mulf %98, %8 : vector<8x128xf32>
    %100 = math.tanh %99 : vector<8x128xf32>
    %cst_48 = arith.constant 1.000000e+00 : f32
    %101 = vector.broadcast %cst_48 : f32 to vector<8x128xf32>
    %102 = arith.addf %100, %101 : vector<8x128xf32>
    %cst_49 = arith.constant 5.000000e-01 : f32
    %103 = vector.broadcast %cst_49 : f32 to vector<8x128xf32>
    %104 = arith.mulf %103, %102 : vector<8x128xf32>
    %105 = arith.select %5, %100, %104 : vector<8x128xi1>, vector<8x128xf32>
    %c96_i32_50 = arith.constant 96 : i32
    %106 = tpu.dynamic_rotate %105 by %c96_i32_50 dim 1 : vector<8x128xf32>, i32 -> vector<8x128xf32>
    %c64_i32_51 = arith.constant 64 : i32
    %107 = tpu.dynamic_rotate %105 by %c64_i32_51 dim 1 : vector<8x128xf32>, i32 -> vector<8x128xf32>
    %c32_i32_52 = arith.constant 32 : i32
    %108 = tpu.dynamic_rotate %105 by %c32_i32_52 dim 1 : vector<8x128xf32>, i32 -> vector<8x128xf32>
    %109 = arith.mulf %106, %88 : vector<8x128xf32>
    %110 = arith.mulf %105, %107 : vector<8x128xf32>
    %111 = arith.addf %109, %110 : vector<8x128xf32>
    %112 = math.tanh %111 : vector<8x128xf32>
    %113 = arith.mulf %108, %112 : vector<8x128xf32>
    %114 = arith.index_cast %94 : i32 to index
    %c0_53 = arith.constant 0 : index
    %115 = vector.load %arg10[%114, %c0_53] : memref<64x128xf32, #tpu.memory_space<vmem>>, vector<8x128xf32>
    tpu.vector_store %arg10[%114, %c0_53], %113 {strides = array<i32>} : memref<64x128xf32, #tpu.memory_space<vmem>>, vector<8x128xf32>,
    %c4_i32 = arith.constant 4 : i32
    %c8_i32_54 = arith.constant 8 : i32
    %116 = arith.muli %c4_i32, %c8_i32_54 : i32
    %117 = tpu.assume_multiple %116, 8 : i32
    %118 = arith.index_cast %117 : i32 to index
    %c0_55 = arith.constant 0 : index
    %119 = vector.load %arg9[%118, %c0_55] : memref<64x128xf32, #tpu.memory_space<vmem>>, vector<8x128xf32>
    %cst_56 = arith.constant dense<0.000000e+00> : vector<8x128xf32>
    %120 = tpu.matmul %113, %19, %cst_56 {dimension_numbers = #tpu.dot_dimension_numbers<[1], [0], [0], [1], [0, 0, 1, 1], [], []>} : vector<8x128xf32>, vector<128x128xf32>, vector<8x128xf32> -> vector<8x128xf32>
    %121 = arith.addf %119, %120 : vector<8x128xf32>
    %122 = arith.mulf %121, %8 : vector<8x128xf32>
    %123 = math.tanh %122 : vector<8x128xf32>
    %cst_57 = arith.constant 1.000000e+00 : f32
    %124 = vector.broadcast %cst_57 : f32 to vector<8x128xf32>
    %125 = arith.addf %123, %124 : vector<8x128xf32>
    %cst_58 = arith.constant 5.000000e-01 : f32
    %126 = vector.broadcast %cst_58 : f32 to vector<8x128xf32>
    %127 = arith.mulf %126, %125 : vector<8x128xf32>
    %128 = arith.select %5, %123, %127 : vector<8x128xi1>, vector<8x128xf32>
    %c96_i32_59 = arith.constant 96 : i32
    %129 = tpu.dynamic_rotate %128 by %c96_i32_59 dim 1 : vector<8x128xf32>, i32 -> vector<8x128xf32>
    %c64_i32_60 = arith.constant 64 : i32
    %130 = tpu.dynamic_rotate %128 by %c64_i32_60 dim 1 : vector<8x128xf32>, i32 -> vector<8x128xf32>
    %c32_i32_61 = arith.constant 32 : i32
    %131 = tpu.dynamic_rotate %128 by %c32_i32_61 dim 1 : vector<8x128xf32>, i32 -> vector<8x128xf32>
    %132 = arith.mulf %129, %111 : vector<8x128xf32>
    %133 = arith.mulf %128, %130 : vector<8x128xf32>
    %134 = arith.addf %132, %133 : vector<8x128xf32>
    %135 = math.tanh %134 : vector<8x128xf32>
    %136 = arith.mulf %131, %135 : vector<8x128xf32>
    %137 = arith.index_cast %117 : i32 to index
    %c0_62 = arith.constant 0 : index
    %138 = vector.load %arg10[%137, %c0_62] : memref<64x128xf32, #tpu.memory_space<vmem>>, vector<8x128xf32>
    tpu.vector_store %arg10[%137, %c0_62], %136 {strides = array<i32>} : memref<64x128xf32, #tpu.memory_space<vmem>>, vector<8x128xf32>,
    %c5_i32 = arith.constant 5 : i32
    %c8_i32_63 = arith.constant 8 : i32
    %139 = arith.muli %c5_i32, %c8_i32_63 : i32
    %140 = tpu.assume_multiple %139, 8 : i32
    %141 = arith.index_cast %140 : i32 to index
    %c0_64 = arith.constant 0 : index
    %142 = vector.load %arg9[%141, %c0_64] : memref<64x128xf32, #tpu.memory_space<vmem>>, vector<8x128xf32>
    %cst_65 = arith.constant dense<0.000000e+00> : vector<8x128xf32>
    %143 = tpu.matmul %136, %19, %cst_65 {dimension_numbers = #tpu.dot_dimension_numbers<[1], [0], [0], [1], [0, 0, 1, 1], [], []>} : vector<8x128xf32>, vector<128x128xf32>, vector<8x128xf32> -> vector<8x128xf32>
    %144 = arith.addf %142, %143 : vector<8x128xf32>
    %145 = arith.mulf %144, %8 : vector<8x128xf32>
    %146 = math.tanh %145 : vector<8x128xf32>
    %cst_66 = arith.constant 1.000000e+00 : f32
    %147 = vector.broadcast %cst_66 : f32 to vector<8x128xf32>
    %148 = arith.addf %146, %147 : vector<8x128xf32>
    %cst_67 = arith.constant 5.000000e-01 : f32
    %149 = vector.broadcast %cst_67 : f32 to vector<8x128xf32>
    %150 = arith.mulf %149, %148 : vector<8x128xf32>
    %151 = arith.select %5, %146, %150 : vector<8x128xi1>, vector<8x128xf32>
    %c96_i32_68 = arith.constant 96 : i32
    %152 = tpu.dynamic_rotate %151 by %c96_i32_68 dim 1 : vector<8x128xf32>, i32 -> vector<8x128xf32>
    %c64_i32_69 = arith.constant 64 : i32
    %153 = tpu.dynamic_rotate %151 by %c64_i32_69 dim 1 : vector<8x128xf32>, i32 -> vector<8x128xf32>
    %c32_i32_70 = arith.constant 32 : i32
    %154 = tpu.dynamic_rotate %151 by %c32_i32_70 dim 1 : vector<8x128xf32>, i32 -> vector<8x128xf32>
    %155 = arith.mulf %152, %134 : vector<8x128xf32>
    %156 = arith.mulf %151, %153 : vector<8x128xf32>
    %157 = arith.addf %155, %156 : vector<8x128xf32>
    %158 = math.tanh %157 : vector<8x128xf32>
    %159 = arith.mulf %154, %158 : vector<8x128xf32>
    %160 = arith.index_cast %140 : i32 to index
    %c0_71 = arith.constant 0 : index
    %161 = vector.load %arg10[%160, %c0_71] : memref<64x128xf32, #tpu.memory_space<vmem>>, vector<8x128xf32>
    tpu.vector_store %arg10[%160, %c0_71], %159 {strides = array<i32>} : memref<64x128xf32, #tpu.memory_space<vmem>>, vector<8x128xf32>,
    %c6_i32 = arith.constant 6 : i32
    %c8_i32_72 = arith.constant 8 : i32
    %162 = arith.muli %c6_i32, %c8_i32_72 : i32
    %163 = tpu.assume_multiple %162, 8 : i32
    %164 = arith.index_cast %163 : i32 to index
    %c0_73 = arith.constant 0 : index
    %165 = vector.load %arg9[%164, %c0_73] : memref<64x128xf32, #tpu.memory_space<vmem>>, vector<8x128xf32>
    %cst_74 = arith.constant dense<0.000000e+00> : vector<8x128xf32>
    %166 = tpu.matmul %159, %19, %cst_74 {dimension_numbers = #tpu.dot_dimension_numbers<[1], [0], [0], [1], [0, 0, 1, 1], [], []>} : vector<8x128xf32>, vector<128x128xf32>, vector<8x128xf32> -> vector<8x128xf32>
    %167 = arith.addf %165, %166 : vector<8x128xf32>
    %168 = arith.mulf %167, %8 : vector<8x128xf32>
    %169 = math.tanh %168 : vector<8x128xf32>
    %cst_75 = arith.constant 1.000000e+00 : f32
    %170 = vector.broadcast %cst_75 : f32 to vector<8x128xf32>
    %171 = arith.addf %169, %170 : vector<8x128xf32>
    %cst_76 = arith.constant 5.000000e-01 : f32
    %172 = vector.broadcast %cst_76 : f32 to vector<8x128xf32>
    %173 = arith.mulf %172, %171 : vector<8x128xf32>
    %174 = arith.select %5, %169, %173 : vector<8x128xi1>, vector<8x128xf32>
    %c96_i32_77 = arith.constant 96 : i32
    %175 = tpu.dynamic_rotate %174 by %c96_i32_77 dim 1 : vector<8x128xf32>, i32 -> vector<8x128xf32>
    %c64_i32_78 = arith.constant 64 : i32
    %176 = tpu.dynamic_rotate %174 by %c64_i32_78 dim 1 : vector<8x128xf32>, i32 -> vector<8x128xf32>
    %c32_i32_79 = arith.constant 32 : i32
    %177 = tpu.dynamic_rotate %174 by %c32_i32_79 dim 1 : vector<8x128xf32>, i32 -> vector<8x128xf32>
    %178 = arith.mulf %175, %157 : vector<8x128xf32>
    %179 = arith.mulf %174, %176 : vector<8x128xf32>
    %180 = arith.addf %178, %179 : vector<8x128xf32>
    %181 = math.tanh %180 : vector<8x128xf32>
    %182 = arith.mulf %177, %181 : vector<8x128xf32>
    %183 = arith.index_cast %163 : i32 to index
    %c0_80 = arith.constant 0 : index
    %184 = vector.load %arg10[%183, %c0_80] : memref<64x128xf32, #tpu.memory_space<vmem>>, vector<8x128xf32>
    tpu.vector_store %arg10[%183, %c0_80], %182 {strides = array<i32>} : memref<64x128xf32, #tpu.memory_space<vmem>>, vector<8x128xf32>,
    %c7_i32 = arith.constant 7 : i32
    %c8_i32_81 = arith.constant 8 : i32
    %185 = arith.muli %c7_i32, %c8_i32_81 : i32
    %186 = tpu.assume_multiple %185, 8 : i32
    %187 = arith.index_cast %186 : i32 to index
    %c0_82 = arith.constant 0 : index
    %188 = vector.load %arg9[%187, %c0_82] : memref<64x128xf32, #tpu.memory_space<vmem>>, vector<8x128xf32>
    %cst_83 = arith.constant dense<0.000000e+00> : vector<8x128xf32>
    %189 = tpu.matmul %182, %19, %cst_83 {dimension_numbers = #tpu.dot_dimension_numbers<[1], [0], [0], [1], [0, 0, 1, 1], [], []>} : vector<8x128xf32>, vector<128x128xf32>, vector<8x128xf32> -> vector<8x128xf32>
    %190 = arith.addf %188, %189 : vector<8x128xf32>
    %191 = arith.mulf %190, %8 : vector<8x128xf32>
    %192 = math.tanh %191 : vector<8x128xf32>
    %cst_84 = arith.constant 1.000000e+00 : f32
    %193 = vector.broadcast %cst_84 : f32 to vector<8x128xf32>
    %194 = arith.addf %192, %193 : vector<8x128xf32>
    %cst_85 = arith.constant 5.000000e-01 : f32
    %195 = vector.broadcast %cst_85 : f32 to vector<8x128xf32>
    %196 = arith.mulf %195, %194 : vector<8x128xf32>
    %197 = arith.select %5, %192, %196 : vector<8x128xi1>, vector<8x128xf32>
    %c96_i32_86 = arith.constant 96 : i32
    %198 = tpu.dynamic_rotate %197 by %c96_i32_86 dim 1 : vector<8x128xf32>, i32 -> vector<8x128xf32>
    %c64_i32_87 = arith.constant 64 : i32
    %199 = tpu.dynamic_rotate %197 by %c64_i32_87 dim 1 : vector<8x128xf32>, i32 -> vector<8x128xf32>
    %c32_i32_88 = arith.constant 32 : i32
    %200 = tpu.dynamic_rotate %197 by %c32_i32_88 dim 1 : vector<8x128xf32>, i32 -> vector<8x128xf32>
    %201 = arith.mulf %198, %180 : vector<8x128xf32>
    %202 = arith.mulf %197, %199 : vector<8x128xf32>
    %203 = arith.addf %201, %202 : vector<8x128xf32>
    %204 = math.tanh %203 : vector<8x128xf32>
    %205 = arith.mulf %200, %204 : vector<8x128xf32>
    %206 = arith.index_cast %186 : i32 to index
    %c0_89 = arith.constant 0 : index
    %207 = vector.load %arg10[%206, %c0_89] : memref<64x128xf32, #tpu.memory_space<vmem>>, vector<8x128xf32>
    tpu.vector_store %arg10[%206, %c0_89], %205 {strides = array<i32>} : memref<64x128xf32, #tpu.memory_space<vmem>>, vector<8x128xf32>,
    %c8_i32_90 = arith.constant 8 : i32
    %c1 = arith.constant 1 : index
    %c0_91 = arith.constant 0 : index
    %c0_92 = arith.constant 0 : index
    %208 = vector.load %arg1[%c1, %c0_91, %c0_92] : memref<2x128x128xf32, #tpu.memory_space<vmem>>, vector<1x128x128xf32>
    %209 = vector.shape_cast %208 : vector<1x128x128xf32> to vector<128x128xf32>
    %c0_93 = arith.constant 0 : index
    %c0_94 = arith.constant 0 : index
    %210 = vector.load %arg10[%c0_93, %c0_94] : memref<64x128xf32, #tpu.memory_space<vmem>>, vector<64x128xf32>
    %cst_95 = arith.constant dense<0.000000e+00> : vector<64x128xf32>
    %211 = tpu.matmul %210, %209, %cst_95 {dimension_numbers = #tpu.dot_dimension_numbers<[1], [0], [0], [1], [0, 0, 1, 1], [], []>} : vector<64x128xf32>, vector<128x128xf32>, vector<64x128xf32> -> vector<64x128xf32>
    %c1_96 = arith.constant 1 : index
    %c0_97 = arith.constant 0 : index
    %c0_98 = arith.constant 0 : index
    %212 = vector.load %arg3[%c1_96, %c0_97, %c0_98] : memref<2x1x128xf32, #tpu.memory_space<vmem>>, vector<1x1x128xf32>
    %213 = vector.shape_cast %212 : vector<1x1x128xf32> to vector<1x128xf32>
    %214 = vector.broadcast %213 : vector<1x128xf32> to vector<64x128xf32>
    %215 = arith.addf %211, %214 : vector<64x128xf32>
    %c0_99 = arith.constant 0 : index
    %c0_100 = arith.constant 0 : index
    %216 = vector.load %arg9[%c0_99, %c0_100] : memref<64x128xf32, #tpu.memory_space<vmem>>, vector<64x128xf32>
    tpu.vector_store %arg9[%c0_99, %c0_100], %215 {strides = array<i32>} : memref<64x128xf32, #tpu.memory_space<vmem>>, vector<64x128xf32>,
    %c1_101 = arith.constant 1 : index
    %c0_102 = arith.constant 0 : index
    %c0_103 = arith.constant 0 : index
    %217 = vector.load %arg2[%c1_101, %c0_102, %c0_103] : memref<2x128x128xf32, #tpu.memory_space<vmem>>, vector<1x128x128xf32>
    %218 = vector.shape_cast %217 : vector<1x128x128xf32> to vector<128x128xf32>
    %c1_104 = arith.constant 1 : index
    %c0_105 = arith.constant 0 : index
    %c0_106 = arith.constant 0 : index
    %219 = vector.load %arg4[%c1_104, %c0_105, %c0_106] : memref<2x8x128xf32, #tpu.memory_space<vmem>>, vector<1x8x128xf32>
    %220 = vector.shape_cast %219 : vector<1x8x128xf32> to vector<8x128xf32>
    %c1_107 = arith.constant 1 : index
    %c0_108 = arith.constant 0 : index
    %c0_109 = arith.constant 0 : index
    %221 = vector.load %arg5[%c1_107, %c0_108, %c0_109] : memref<2x8x128xf32, #tpu.memory_space<vmem>>, vector<1x8x128xf32>
    %222 = vector.shape_cast %221 : vector<1x8x128xf32> to vector<8x128xf32>
    %c0_i32_110 = arith.constant 0 : i32
    %c8_i32_111 = arith.constant 8 : i32
    %223 = arith.muli %c0_i32_110, %c8_i32_111 : i32
    %224 = tpu.assume_multiple %223, 8 : i32
    %225 = arith.index_cast %224 : i32 to index
    %c0_112 = arith.constant 0 : index
    %226 = vector.load %arg9[%225, %c0_112] : memref<64x128xf32, #tpu.memory_space<vmem>>, vector<8x128xf32>
    %cst_113 = arith.constant dense<0.000000e+00> : vector<8x128xf32>
    %227 = tpu.matmul %220, %218, %cst_113 {dimension_numbers = #tpu.dot_dimension_numbers<[1], [0], [0], [1], [0, 0, 1, 1], [], []>} : vector<8x128xf32>, vector<128x128xf32>, vector<8x128xf32> -> vector<8x128xf32>
    %228 = arith.addf %226, %227 : vector<8x128xf32>
    %229 = arith.mulf %228, %8 : vector<8x128xf32>
    %230 = math.tanh %229 : vector<8x128xf32>
    %cst_114 = arith.constant 1.000000e+00 : f32
    %231 = vector.broadcast %cst_114 : f32 to vector<8x128xf32>
    %232 = arith.addf %230, %231 : vector<8x128xf32>
    %cst_115 = arith.constant 5.000000e-01 : f32
    %233 = vector.broadcast %cst_115 : f32 to vector<8x128xf32>
    %234 = arith.mulf %233, %232 : vector<8x128xf32>
    %235 = arith.select %5, %230, %234 : vector<8x128xi1>, vector<8x128xf32>
    %c96_i32_116 = arith.constant 96 : i32
    %236 = tpu.dynamic_rotate %235 by %c96_i32_116 dim 1 : vector<8x128xf32>, i32 -> vector<8x128xf32>
    %c64_i32_117 = arith.constant 64 : i32
    %237 = tpu.dynamic_rotate %235 by %c64_i32_117 dim 1 : vector<8x128xf32>, i32 -> vector<8x128xf32>
    %c32_i32_118 = arith.constant 32 : i32
    %238 = tpu.dynamic_rotate %235 by %c32_i32_118 dim 1 : vector<8x128xf32>, i32 -> vector<8x128xf32>
    %239 = arith.mulf %236, %222 : vector<8x128xf32>
    %240 = arith.mulf %235, %237 : vector<8x128xf32>
    %241 = arith.addf %239, %240 : vector<8x128xf32>
    %242 = math.tanh %241 : vector<8x128xf32>
    %243 = arith.mulf %238, %242 : vector<8x128xf32>
    %c1_i32_119 = arith.constant 1 : i32
    %c8_i32_120 = arith.constant 8 : i32
    %244 = arith.muli %c1_i32_119, %c8_i32_120 : i32
    %245 = tpu.assume_multiple %244, 8 : i32
    %246 = arith.index_cast %245 : i32 to index
    %c0_121 = arith.constant 0 : index
    %247 = vector.load %arg9[%246, %c0_121] : memref<64x128xf32, #tpu.memory_space<vmem>>, vector<8x128xf32>
    %cst_122 = arith.constant dense<0.000000e+00> : vector<8x128xf32>
    %248 = tpu.matmul %243, %218, %cst_122 {dimension_numbers = #tpu.dot_dimension_numbers<[1], [0], [0], [1], [0, 0, 1, 1], [], []>} : vector<8x128xf32>, vector<128x128xf32>, vector<8x128xf32> -> vector<8x128xf32>
    %249 = arith.addf %247, %248 : vector<8x128xf32>
    %250 = arith.mulf %249, %8 : vector<8x128xf32>
    %251 = math.tanh %250 : vector<8x128xf32>
    %cst_123 = arith.constant 1.000000e+00 : f32
    %252 = vector.broadcast %cst_123 : f32 to vector<8x128xf32>
    %253 = arith.addf %251, %252 : vector<8x128xf32>
    %cst_124 = arith.constant 5.000000e-01 : f32
    %254 = vector.broadcast %cst_124 : f32 to vector<8x128xf32>
    %255 = arith.mulf %254, %253 : vector<8x128xf32>
    %256 = arith.select %5, %251, %255 : vector<8x128xi1>, vector<8x128xf32>
    %c96_i32_125 = arith.constant 96 : i32
    %257 = tpu.dynamic_rotate %256 by %c96_i32_125 dim 1 : vector<8x128xf32>, i32 -> vector<8x128xf32>
    %c64_i32_126 = arith.constant 64 : i32
    %258 = tpu.dynamic_rotate %256 by %c64_i32_126 dim 1 : vector<8x128xf32>, i32 -> vector<8x128xf32>
    %c32_i32_127 = arith.constant 32 : i32
    %259 = tpu.dynamic_rotate %256 by %c32_i32_127 dim 1 : vector<8x128xf32>, i32 -> vector<8x128xf32>
    %260 = arith.mulf %257, %241 : vector<8x128xf32>
    %261 = arith.mulf %256, %258 : vector<8x128xf32>
    %262 = arith.addf %260, %261 : vector<8x128xf32>
    %263 = math.tanh %262 : vector<8x128xf32>
    %264 = arith.mulf %259, %263 : vector<8x128xf32>
    %c2_i32_128 = arith.constant 2 : i32
    %c8_i32_129 = arith.constant 8 : i32
    %265 = arith.muli %c2_i32_128, %c8_i32_129 : i32
    %266 = tpu.assume_multiple %265, 8 : i32
    %267 = arith.index_cast %266 : i32 to index
    %c0_130 = arith.constant 0 : index
    %268 = vector.load %arg9[%267, %c0_130] : memref<64x128xf32, #tpu.memory_space<vmem>>, vector<8x128xf32>
    %cst_131 = arith.constant dense<0.000000e+00> : vector<8x128xf32>
    %269 = tpu.matmul %264, %218, %cst_131 {dimension_numbers = #tpu.dot_dimension_numbers<[1], [0], [0], [1], [0, 0, 1, 1], [], []>} : vector<8x128xf32>, vector<128x128xf32>, vector<8x128xf32> -> vector<8x128xf32>
    %270 = arith.addf %268, %269 : vector<8x128xf32>
    %271 = arith.mulf %270, %8 : vector<8x128xf32>
    %272 = math.tanh %271 : vector<8x128xf32>
    %cst_132 = arith.constant 1.000000e+00 : f32
    %273 = vector.broadcast %cst_132 : f32 to vector<8x128xf32>
    %274 = arith.addf %272, %273 : vector<8x128xf32>
    %cst_133 = arith.constant 5.000000e-01 : f32
    %275 = vector.broadcast %cst_133 : f32 to vector<8x128xf32>
    %276 = arith.mulf %275, %274 : vector<8x128xf32>
    %277 = arith.select %5, %272, %276 : vector<8x128xi1>, vector<8x128xf32>
    %c96_i32_134 = arith.constant 96 : i32
    %278 = tpu.dynamic_rotate %277 by %c96_i32_134 dim 1 : vector<8x128xf32>, i32 -> vector<8x128xf32>
    %c64_i32_135 = arith.constant 64 : i32
    %279 = tpu.dynamic_rotate %277 by %c64_i32_135 dim 1 : vector<8x128xf32>, i32 -> vector<8x128xf32>
    %c32_i32_136 = arith.constant 32 : i32
    %280 = tpu.dynamic_rotate %277 by %c32_i32_136 dim 1 : vector<8x128xf32>, i32 -> vector<8x128xf32>
    %281 = arith.mulf %278, %262 : vector<8x128xf32>
    %282 = arith.mulf %277, %279 : vector<8x128xf32>
    %283 = arith.addf %281, %282 : vector<8x128xf32>
    %284 = math.tanh %283 : vector<8x128xf32>
    %285 = arith.mulf %280, %284 : vector<8x128xf32>
    %c3_i32_137 = arith.constant 3 : i32
    %c8_i32_138 = arith.constant 8 : i32
    %286 = arith.muli %c3_i32_137, %c8_i32_138 : i32
    %287 = tpu.assume_multiple %286, 8 : i32
    %288 = arith.index_cast %287 : i32 to index
    %c0_139 = arith.constant 0 : index
    %289 = vector.load %arg9[%288, %c0_139] : memref<64x128xf32, #tpu.memory_space<vmem>>, vector<8x128xf32>
    %cst_140 = arith.constant dense<0.000000e+00> : vector<8x128xf32>
    %290 = tpu.matmul %285, %218, %cst_140 {dimension_numbers = #tpu.dot_dimension_numbers<[1], [0], [0], [1], [0, 0, 1, 1], [], []>} : vector<8x128xf32>, vector<128x128xf32>, vector<8x128xf32> -> vector<8x128xf32>
    %291 = arith.addf %289, %290 : vector<8x128xf32>
    %292 = arith.mulf %291, %8 : vector<8x128xf32>
    %293 = math.tanh %292 : vector<8x128xf32>
    %cst_141 = arith.constant 1.000000e+00 : f32
    %294 = vector.broadcast %cst_141 : f32 to vector<8x128xf32>
    %295 = arith.addf %293, %294 : vector<8x128xf32>
    %cst_142 = arith.constant 5.000000e-01 : f32
    %296 = vector.broadcast %cst_142 : f32 to vector<8x128xf32>
    %297 = arith.mulf %296, %295 : vector<8x128xf32>
    %298 = arith.select %5, %293, %297 : vector<8x128xi1>, vector<8x128xf32>
    %c96_i32_143 = arith.constant 96 : i32
    %299 = tpu.dynamic_rotate %298 by %c96_i32_143 dim 1 : vector<8x128xf32>, i32 -> vector<8x128xf32>
    %c64_i32_144 = arith.constant 64 : i32
    %300 = tpu.dynamic_rotate %298 by %c64_i32_144 dim 1 : vector<8x128xf32>, i32 -> vector<8x128xf32>
    %c32_i32_145 = arith.constant 32 : i32
    %301 = tpu.dynamic_rotate %298 by %c32_i32_145 dim 1 : vector<8x128xf32>, i32 -> vector<8x128xf32>
    %302 = arith.mulf %299, %283 : vector<8x128xf32>
    %303 = arith.mulf %298, %300 : vector<8x128xf32>
    %304 = arith.addf %302, %303 : vector<8x128xf32>
    %305 = math.tanh %304 : vector<8x128xf32>
    %306 = arith.mulf %301, %305 : vector<8x128xf32>
    %c4_i32_146 = arith.constant 4 : i32
    %c8_i32_147 = arith.constant 8 : i32
    %307 = arith.muli %c4_i32_146, %c8_i32_147 : i32
    %308 = tpu.assume_multiple %307, 8 : i32
    %309 = arith.index_cast %308 : i32 to index
    %c0_148 = arith.constant 0 : index
    %310 = vector.load %arg9[%309, %c0_148] : memref<64x128xf32, #tpu.memory_space<vmem>>, vector<8x128xf32>
    %cst_149 = arith.constant dense<0.000000e+00> : vector<8x128xf32>
    %311 = tpu.matmul %306, %218, %cst_149 {dimension_numbers = #tpu.dot_dimension_numbers<[1], [0], [0], [1], [0, 0, 1, 1], [], []>} : vector<8x128xf32>, vector<128x128xf32>, vector<8x128xf32> -> vector<8x128xf32>
    %312 = arith.addf %310, %311 : vector<8x128xf32>
    %313 = arith.mulf %312, %8 : vector<8x128xf32>
    %314 = math.tanh %313 : vector<8x128xf32>
    %cst_150 = arith.constant 1.000000e+00 : f32
    %315 = vector.broadcast %cst_150 : f32 to vector<8x128xf32>
    %316 = arith.addf %314, %315 : vector<8x128xf32>
    %cst_151 = arith.constant 5.000000e-01 : f32
    %317 = vector.broadcast %cst_151 : f32 to vector<8x128xf32>
    %318 = arith.mulf %317, %316 : vector<8x128xf32>
    %319 = arith.select %5, %314, %318 : vector<8x128xi1>, vector<8x128xf32>
    %c96_i32_152 = arith.constant 96 : i32
    %320 = tpu.dynamic_rotate %319 by %c96_i32_152 dim 1 : vector<8x128xf32>, i32 -> vector<8x128xf32>
    %c64_i32_153 = arith.constant 64 : i32
    %321 = tpu.dynamic_rotate %319 by %c64_i32_153 dim 1 : vector<8x128xf32>, i32 -> vector<8x128xf32>
    %c32_i32_154 = arith.constant 32 : i32
    %322 = tpu.dynamic_rotate %319 by %c32_i32_154 dim 1 : vector<8x128xf32>, i32 -> vector<8x128xf32>
    %323 = arith.mulf %320, %304 : vector<8x128xf32>
    %324 = arith.mulf %319, %321 : vector<8x128xf32>
    %325 = arith.addf %323, %324 : vector<8x128xf32>
    %326 = math.tanh %325 : vector<8x128xf32>
    %327 = arith.mulf %322, %326 : vector<8x128xf32>
    %c5_i32_155 = arith.constant 5 : i32
    %c8_i32_156 = arith.constant 8 : i32
    %328 = arith.muli %c5_i32_155, %c8_i32_156 : i32
    %329 = tpu.assume_multiple %328, 8 : i32
    %330 = arith.index_cast %329 : i32 to index
    %c0_157 = arith.constant 0 : index
    %331 = vector.load %arg9[%330, %c0_157] : memref<64x128xf32, #tpu.memory_space<vmem>>, vector<8x128xf32>
    %cst_158 = arith.constant dense<0.000000e+00> : vector<8x128xf32>
    %332 = tpu.matmul %327, %218, %cst_158 {dimension_numbers = #tpu.dot_dimension_numbers<[1], [0], [0], [1], [0, 0, 1, 1], [], []>} : vector<8x128xf32>, vector<128x128xf32>, vector<8x128xf32> -> vector<8x128xf32>
    %333 = arith.addf %331, %332 : vector<8x128xf32>
    %334 = arith.mulf %333, %8 : vector<8x128xf32>
    %335 = math.tanh %334 : vector<8x128xf32>
    %cst_159 = arith.constant 1.000000e+00 : f32
    %336 = vector.broadcast %cst_159 : f32 to vector<8x128xf32>
    %337 = arith.addf %335, %336 : vector<8x128xf32>
    %cst_160 = arith.constant 5.000000e-01 : f32
    %338 = vector.broadcast %cst_160 : f32 to vector<8x128xf32>
    %339 = arith.mulf %338, %337 : vector<8x128xf32>
    %340 = arith.select %5, %335, %339 : vector<8x128xi1>, vector<8x128xf32>
    %c96_i32_161 = arith.constant 96 : i32
    %341 = tpu.dynamic_rotate %340 by %c96_i32_161 dim 1 : vector<8x128xf32>, i32 -> vector<8x128xf32>
    %c64_i32_162 = arith.constant 64 : i32
    %342 = tpu.dynamic_rotate %340 by %c64_i32_162 dim 1 : vector<8x128xf32>, i32 -> vector<8x128xf32>
    %c32_i32_163 = arith.constant 32 : i32
    %343 = tpu.dynamic_rotate %340 by %c32_i32_163 dim 1 : vector<8x128xf32>, i32 -> vector<8x128xf32>
    %344 = arith.mulf %341, %325 : vector<8x128xf32>
    %345 = arith.mulf %340, %342 : vector<8x128xf32>
    %346 = arith.addf %344, %345 : vector<8x128xf32>
    %347 = math.tanh %346 : vector<8x128xf32>
    %348 = arith.mulf %343, %347 : vector<8x128xf32>
    %c6_i32_164 = arith.constant 6 : i32
    %c8_i32_165 = arith.constant 8 : i32
    %349 = arith.muli %c6_i32_164, %c8_i32_165 : i32
    %350 = tpu.assume_multiple %349, 8 : i32
    %351 = arith.index_cast %350 : i32 to index
    %c0_166 = arith.constant 0 : index
    %352 = vector.load %arg9[%351, %c0_166] : memref<64x128xf32, #tpu.memory_space<vmem>>, vector<8x128xf32>
    %cst_167 = arith.constant dense<0.000000e+00> : vector<8x128xf32>
    %353 = tpu.matmul %348, %218, %cst_167 {dimension_numbers = #tpu.dot_dimension_numbers<[1], [0], [0], [1], [0, 0, 1, 1], [], []>} : vector<8x128xf32>, vector<128x128xf32>, vector<8x128xf32> -> vector<8x128xf32>
    %354 = arith.addf %352, %353 : vector<8x128xf32>
    %355 = arith.mulf %354, %8 : vector<8x128xf32>
    %356 = math.tanh %355 : vector<8x128xf32>
    %cst_168 = arith.constant 1.000000e+00 : f32
    %357 = vector.broadcast %cst_168 : f32 to vector<8x128xf32>
    %358 = arith.addf %356, %357 : vector<8x128xf32>
    %cst_169 = arith.constant 5.000000e-01 : f32
    %359 = vector.broadcast %cst_169 : f32 to vector<8x128xf32>
    %360 = arith.mulf %359, %358 : vector<8x128xf32>
    %361 = arith.select %5, %356, %360 : vector<8x128xi1>, vector<8x128xf32>
    %c96_i32_170 = arith.constant 96 : i32
    %362 = tpu.dynamic_rotate %361 by %c96_i32_170 dim 1 : vector<8x128xf32>, i32 -> vector<8x128xf32>
    %c64_i32_171 = arith.constant 64 : i32
    %363 = tpu.dynamic_rotate %361 by %c64_i32_171 dim 1 : vector<8x128xf32>, i32 -> vector<8x128xf32>
    %c32_i32_172 = arith.constant 32 : i32
    %364 = tpu.dynamic_rotate %361 by %c32_i32_172 dim 1 : vector<8x128xf32>, i32 -> vector<8x128xf32>
    %365 = arith.mulf %362, %346 : vector<8x128xf32>
    %366 = arith.mulf %361, %363 : vector<8x128xf32>
    %367 = arith.addf %365, %366 : vector<8x128xf32>
    %368 = math.tanh %367 : vector<8x128xf32>
    %369 = arith.mulf %364, %368 : vector<8x128xf32>
    %c7_i32_173 = arith.constant 7 : i32
    %c8_i32_174 = arith.constant 8 : i32
    %370 = arith.muli %c7_i32_173, %c8_i32_174 : i32
    %371 = tpu.assume_multiple %370, 8 : i32
    %372 = arith.index_cast %371 : i32 to index
    %c0_175 = arith.constant 0 : index
    %373 = vector.load %arg9[%372, %c0_175] : memref<64x128xf32, #tpu.memory_space<vmem>>, vector<8x128xf32>
    %cst_176 = arith.constant dense<0.000000e+00> : vector<8x128xf32>
    %374 = tpu.matmul %369, %218, %cst_176 {dimension_numbers = #tpu.dot_dimension_numbers<[1], [0], [0], [1], [0, 0, 1, 1], [], []>} : vector<8x128xf32>, vector<128x128xf32>, vector<8x128xf32> -> vector<8x128xf32>
    %375 = arith.addf %373, %374 : vector<8x128xf32>
    %376 = arith.mulf %375, %8 : vector<8x128xf32>
    %377 = math.tanh %376 : vector<8x128xf32>
    %cst_177 = arith.constant 1.000000e+00 : f32
    %378 = vector.broadcast %cst_177 : f32 to vector<8x128xf32>
    %379 = arith.addf %377, %378 : vector<8x128xf32>
    %cst_178 = arith.constant 5.000000e-01 : f32
    %380 = vector.broadcast %cst_178 : f32 to vector<8x128xf32>
    %381 = arith.mulf %380, %379 : vector<8x128xf32>
    %382 = arith.select %5, %377, %381 : vector<8x128xi1>, vector<8x128xf32>
    %c96_i32_179 = arith.constant 96 : i32
    %383 = tpu.dynamic_rotate %382 by %c96_i32_179 dim 1 : vector<8x128xf32>, i32 -> vector<8x128xf32>
    %c64_i32_180 = arith.constant 64 : i32
    %384 = tpu.dynamic_rotate %382 by %c64_i32_180 dim 1 : vector<8x128xf32>, i32 -> vector<8x128xf32>
    %c32_i32_181 = arith.constant 32 : i32
    %385 = tpu.dynamic_rotate %382 by %c32_i32_181 dim 1 : vector<8x128xf32>, i32 -> vector<8x128xf32>
    %386 = arith.mulf %383, %367 : vector<8x128xf32>
    %387 = arith.mulf %382, %384 : vector<8x128xf32>
    %388 = arith.addf %386, %387 : vector<8x128xf32>
    %389 = math.tanh %388 : vector<8x128xf32>
    %390 = arith.mulf %385, %389 : vector<8x128xf32>
    %c8_i32_182 = arith.constant 8 : i32
    %c0_183 = arith.constant 0 : index
    %c0_184 = arith.constant 0 : index
    %391 = vector.load %arg6[%c0_183, %c0_184] : memref<128x128xf32, #tpu.memory_space<vmem>>, vector<128x128xf32>
    %cst_185 = arith.constant dense<0.000000e+00> : vector<8x128xf32>
    %392 = tpu.matmul %390, %391, %cst_185 {dimension_numbers = #tpu.dot_dimension_numbers<[1], [0], [0], [1], [0, 0, 1, 1], [], []>} : vector<8x128xf32>, vector<128x128xf32>, vector<8x128xf32> -> vector<8x128xf32>
    %c0_186 = arith.constant 0 : index
    %c0_187 = arith.constant 0 : index
    %393 = vector.load %arg7[%c0_186, %c0_187] : memref<1x128xf32, #tpu.memory_space<vmem>>, vector<1x128xf32>
    %394 = vector.broadcast %393 : vector<1x128xf32> to vector<8x128xf32>
    %395 = arith.addf %392, %394 : vector<8x128xf32>
    %c0_188 = arith.constant 0 : index
    %c0_189 = arith.constant 0 : index
    %396 = vector.load %arg8[%c0_188, %c0_189] : memref<8x128xf32, #tpu.memory_space<vmem>>, vector<8x128xf32>
    tpu.vector_store %arg8[%c0_188, %c0_189], %395 {strides = array<i32>} : memref<8x128xf32, #tpu.memory_space<vmem>>, vector<8x128xf32>,
    return
  }
}

</mosaic_0001>

<bundles_post_ra>
// kernel: tpu_custom_call.1
= control target key start
LH: loop header
LB: loop body
LE: loop exit
PB: predicated region body
PF: predicated region fallthrough
CT: control target
= control target key end

     0   :  { %13 = vsyncpa [#allocation5], 0  ;;  %s4390_s0 = inlined_call_operand.hbm [shape: f32[64,128], index: 0, kind: input, shape index: {}]   ;;  %s4391_s1 = inlined_call_operand.hbm [shape: f32[2,128,128], index: 1, kind: input, shape index: {}]   ;;  %s4392_s2 = inlined_call_operand.hbm [shape: f32[2,128,128], index: 2, kind: input, shape index: {}]   ;;  %s4393_s3 = inlined_call_operand.vmem [shape: f32[2,1,128], index: 3, kind: input, shape index: {}]   ;;  %s4394_s4 = inlined_call_operand.hbm [shape: f32[2,8,128], index: 4, kind: input, shape index: {}]   ;;  %s4395_s5 = inlined_call_operand.vmem [shape: f32[2,8,128], index: 5, kind: input, shape index: {}]   ;;  %s4396_s6 = inlined_call_operand.hbm [shape: f32[128,128], index: 6, kind: input, shape index: {}]   ;;  %s4397_s7 = inlined_call_operand.vmem [shape: f32[1,128], index: 7, kind: input, shape index: {}]   ;;  %s4398_s8 = inlined_call_operand.hbm [shape: f32[8,128], index: 8, kind: output, shape index: {}]  }
   0x1   :  { %14 = vsyncpa [#allocation8], 0 }
   0x2   :  { %15 = vsyncpa [#allocation11], 0 }
   0x3   :  { %16 = vsyncpa [#allocation6], 0  ;;  %s3690_s27 = smov [#allocation7]   ;;  %s3691_s29 = smov [#allocation10]  }
   0x4   :  { %s34_s28 = sshll.u32 %s3690_s27, 4  ;;  %s60_s30 = sshll.u32 %s3691_s29, 4  ;;  %s35_s28 = int_to_ptr.vmem [resolvable:$true] %s34_s28  ;;  %s3750_s30 = int_to_ptr.vmem [resolvable:$true] %s60_s30 }
   0x5   :  { %s3550_s11 = scalar_lea.hbm %s4391_s1, 4096 }
   0x6   :  { %p3551_p0 = scmp.ne.s32.totalorder %s4391_s1, %s3550_s11  ;;  %p3554_p1 = scmp.lt.u32.totalorder %s3550_s11, %s4391_s1 }
   0x8   :  { %p3556_p2 = pnand %p3554_p1, %p3551_p0 }
   0xa   :  { %3559 = shalt.err (!%p3556_p2)
}
   0xb   :  { %s3560_s16 = scalar_lea.vmem %s35_s28, 4096  ;;  %p3565_p4 = scmp.lt.s32.totalorder %s35_s28, %s35_s28 }
   0xc   :  { %p3561_p3 = scmp.ne.s32.totalorder %s35_s28, %s3560_s16  ;;  %p3566_p5 = scmp.lt.s32.totalorder %s3560_s16, %s3560_s16 }
   0xe   :  { %p3567_p6 = por %p3566_p5, %p3565_p4 }
  0x10   :  { %p3568_p7 = pnand %p3567_p6, %p3561_p3 }
  0x12   :  { %3571 = shalt.err (!%p3568_p7)
}
  0x13   :  { %s3692_s17 = smov 128   ;;  %s3693_s18 = smov 8  }
  0x14   :  { %40 = dma.hbm_to_vmem [thread:$0]  %s4391_s1, 4096, %s35_s28, [#allocation8], %s3692_s17, %s3692_s17, %s3693_s18  }
  0x15   :  { %s3572_s23 = scalar_lea.hbm %s4394_s4, 256 }
  0x16   :  { %p3573_p8 = scmp.ne.s32.totalorder %s4394_s4, %s3572_s23  ;;  %p3576_p9 = scmp.lt.u32.totalorder %s3572_s23, %s4394_s4 }
  0x18   :  { %p3578_p10 = pnand %p3576_p9, %p3573_p8 }
  0x1a   :  { %3581 = shalt.err (!%p3578_p10)
}
  0x1b   :  { %s3582_s29 = scalar_lea.vmem %s3750_s30, 256  ;;  %p3587_p12 = scmp.lt.s32.totalorder %s3750_s30, %s3750_s30 }
  0x1c   :  { %p3583_p11 = scmp.ne.s32.totalorder %s3750_s30, %s3582_s29  ;;  %p3588_p13 = scmp.lt.s32.totalorder %s3582_s29, %s3582_s29 }
  0x1e   :  { %p3589_p0 = por %p3588_p13, %p3587_p12 }
  0x20   :  { %p3590_p1 = pnand %p3589_p0, %p3583_p11 }
  0x22   :  { %3593 = shalt.err (!%p3590_p1)
}
  0x23   :  { %66 = dma.hbm_to_vmem [thread:$0]  %s4394_s4, 256, %s3750_s30, [#allocation11], %s3692_s17, %s3692_s17, %s3693_s18  }
  0x24   :  { %s3694_s9 = smov [#allocation4]   ;;  %s3695_s11 = smov [#allocation9]  }
  0x25   :  { %s22_s10 = sshll.u32 %s3694_s9, 4  ;;  %s46_s12 = sshll.u32 %s3695_s11, 4  ;;  %s23_s10 = int_to_ptr.vmem [resolvable:$true] %s22_s10  ;;  %s3787_s12 = int_to_ptr.vmem [resolvable:$true] %s46_s12 }
  0x26   :  { %s3594_s15 = scalar_lea.hbm %s4390_s0, 1024 }
  0x27   :  { %p3595_p2 = scmp.ne.s32.totalorder %s4390_s0, %s3594_s15  ;;  %p3598_p3 = scmp.lt.u32.totalorder %s3594_s15, %s4390_s0 }
  0x29   :  { %p3600_p4 = pnand %p3598_p3, %p3595_p2 }
  0x2b   :  { %3603 = shalt.err (!%p3600_p4)
}
  0x2c   :  { %s3604_s4 = scalar_lea.vmem %s23_s10, 1024  ;;  %p3609_p6 = scmp.lt.s32.totalorder %s23_s10, %s23_s10 }
  0x2d   :  { %p3605_p5 = scmp.ne.s32.totalorder %s23_s10, %s3604_s4  ;;  %p3610_p7 = scmp.lt.s32.totalorder %s3604_s4, %s3604_s4 }
  0x2f   :  { %p3611_p8 = por %p3610_p7, %p3609_p6 }
  0x31   :  { %p3612_p9 = pnand %p3611_p8, %p3605_p5 }
  0x33   :  { %3615 = shalt.err (!%p3612_p9)
}
  0x34   :  { %28 = dma.hbm_to_vmem [thread:$0]  %s4390_s0, 1024, %s23_s10, [#allocation5], %s3692_s17, %s3692_s17, %s3693_s18  }
  0x35   :  { %s3616_s25 = scalar_lea.hbm %s4392_s2, 4096 }
  0x36   :  { %p3617_p10 = scmp.ne.s32.totalorder %s4392_s2, %s3616_s25  ;;  %p3620_p11 = scmp.lt.u32.totalorder %s3616_s25, %s4392_s2 }
  0x38   :  { %p3622_p12 = pnand %p3620_p11, %p3617_p10 }
  0x3a   :  { %3625 = shalt.err (!%p3622_p12)
}
  0x3b   :  { %s3626_s28 = scalar_lea.vmem %s3787_s12, 4096  ;;  %p3631_p0 = scmp.lt.s32.totalorder %s3787_s12, %s3787_s12 }
  0x3c   :  { %p3627_p13 = scmp.ne.s32.totalorder %s3787_s12, %s3626_s28  ;;  %p3632_p1 = scmp.lt.s32.totalorder %s3626_s28, %s3626_s28 }
  0x3e   :  { %p3633_p2 = por %p3632_p1, %p3631_p0 }
  0x40   :  { %p3634_p3 = pnand %p3633_p2, %p3627_p13 }
  0x42   :  { %3637 = shalt.err (!%p3634_p3)
}
  0x43   :  { %52 = dma.hbm_to_vmem [thread:$0]  %s4392_s2, 4096, %s3787_s12, [#allocation8], %s3692_s17, %s3692_s17, %s3693_s18  }
  0x44   :  { %s3696_s10 = smov [#allocation12]   ;;  %s3638_s15 = scalar_lea.hbm %s4396_s6, 2048 }
  0x45   :  { %s74_s11 = sshll.u32 %s3696_s10, 4  ;;  %p3639_p4 = scmp.ne.s32.totalorder %s4396_s6, %s3638_s15  ;;  %s75_s11 = int_to_ptr.vmem [resolvable:$true] %s74_s11 }
  0x46   :  { %p3642_p5 = scmp.lt.u32.totalorder %s3638_s15, %s4396_s6 }
  0x48   :  { %p3644_p6 = pnand %p3642_p5, %p3639_p4 }
  0x4a   :  { %3647 = shalt.err (!%p3644_p6)
}
  0x4b   :  { %s3648_s4 = scalar_lea.vmem %s75_s11, 2048  ;;  %p3653_p8 = scmp.lt.s32.totalorder %s75_s11, %s75_s11 }
  0x4c   :  { %p3649_p7 = scmp.ne.s32.totalorder %s75_s11, %s3648_s4  ;;  %p3654_p9 = scmp.lt.s32.totalorder %s3648_s4, %s3648_s4 }
  0x4e   :  { %p3655_p10 = por %p3654_p9, %p3653_p8 }
  0x50   :  { %p3656_p11 = pnand %p3655_p10, %p3649_p7 }
  0x52   :  { %3659 = shalt.err (!%p3656_p11)
}
  0x53   :  { %80 = dma.hbm_to_vmem [thread:$0]  %s4396_s6, 2048, %s75_s11, [#allocation11], %s3692_s17, %s3692_s17, %s3693_s18  }
  0x54   :  { %3682 = dma.done.wait [#allocation5], 1024  }
  0x55   :  { %3683 = vsyncadd [#allocation5], 4294966272 }
  0x56   :  { %3684 = dma.done.wait [#allocation8], 8192  }
  0x57   :  { %3685 = vsyncadd [#allocation8], 4294959104 }
  0x58   :  { %3686 = dma.done.wait [#allocation11], 2304  }
  0x59   :  { %3687 = vsyncadd [#allocation11], 4294964992  ;;  %v3697_v0 = vmov 0.0|0.0   ;;  %vm3698_vm0 = vmmov 0   ;;  %v3699_v1 = vmov 0.0   ;;  %v104_v2 = vld [vmem:[#allocation7] sm:$0xff]  ;;  %v98_v53 = vlaneseq }
  0x5a   :  { %3031 = vmatprep.subr.bf16.mxu1 %v3697_v0  ;;  %2392 = vmatprep.mubr.msk.f32.mxu1 %vm3698_vm0, %v3699_v1  ;;  %v105_v3 = vld [vmem:[#allocation7 + $0x8] sm:$0xff]  ;;  %v248_v4 = vld [vmem:[#allocation9] sm:$0xff]  ;;  %v106_v7 = vld [vmem:[#allocation7 + $0x10] sm:$0xff]  ;;  %v3700_v62 = vmov 0.5   ;;  %s3701_s18 = smov 32   ;;  %s3702_s30 = smov 96  }
  0x5b   :  { %v2999_v5 = vpack.c.bf16 %v105_v3, %v104_v2  ;;  %v249_v6 = vld [vmem:[#allocation9 + $0x8] sm:$0xff]  ;;  %v107_v8 = vld [vmem:[#allocation7 + $0x18] sm:$0xff]  ;;  %v250_v11 = vld [vmem:[#allocation9 + $0x10] sm:$0xff]  ;;  %v99_v54 = vand.u32 127, %v98_v53  ;;  %s3703_s22 = smov 64   ;;  %s3704_s1 = smov [#allocation13]  }
  0x5c   :  { %v3842_v9 = vpack.c.bf16 %v249_v6, %v248_v4  ;;  %v3003_v10 = vpack.c.bf16 %v107_v8, %v106_v7  ;;  %v251_v12 = vld [vmem:[#allocation9 + $0x18] sm:$0xff]  ;;  %v108_v13 = vld [vmem:[#allocation7 + $0x20] sm:$0xff]  ;;  %v109_v14 = vld [vmem:[#allocation7 + $0x28] sm:$0xff]  ;;  %s1963_s28 = sshll.u32 %s3704_s1, 4  ;;  %s1964_s28 = int_to_ptr.vmem [resolvable:$true] %s1963_s28 }
  0x5d   :  { %3000 = vmatprep.subr.bf16.mxu0 %v2999_v5  ;;  %v3845_v15 = vpack.c.bf16 %v251_v12, %v250_v11  ;;  %v3007_v16 = vpack.c.bf16 %v109_v14, %v108_v13  ;;  %v252_v17 = vld [vmem:[#allocation9 + $0x20] sm:$0xff]  ;;  %v253_v18 = vld [vmem:[#allocation9 + $0x28] sm:$0xff]  ;;  %v110_v19 = vld [vmem:[#allocation7 + $0x30] sm:$0xff]  ;;  %vm100_vm1 = vcmp.ge.s32.totalorder %v99_v54, 64  ;;  %vm101_vm2 = vcmp.lt.s32.totalorder %v99_v54, 96  ;;  %s3660_s0 = scalar_lea.vmem %s1964_s28, 128  ;;  %p3665_p13 = scmp.lt.s32.totalorder %s1964_s28, %s1964_s28 }
  0x5e   :  { %3002 = vmatpush3.bf16.msra.mxu0 %v2999_v5  ;;  %3033 = vmatpush3.bf16.msra.mxu1 %v3842_v9  ;;  %v111_v20 = vld [vmem:[#allocation7 + $0x38] sm:$0xff]  ;;  %v3849_v21 = vpack.c.bf16 %v253_v18, %v252_v17  ;;  %v254_v23 = vld [vmem:[#allocation9 + $0x30] sm:$0xff]  ;;  %v112_v25 = vld [vmem:[#allocation7 + $0x40] sm:$0xff]  ;;  %p3661_p12 = scmp.ne.s32.totalorder %s1964_s28, %s3660_s0  ;;  %p3666_p0 = scmp.lt.s32.totalorder %s3660_s0, %s3660_s0 }
  0x5f   :  { %3004 = vmatprep.subr.bf16.mxu0 %v3003_v10  ;;  %3034 = vmatprep.subr.bf16.mxu1 %v3697_v0  ;;  %v3011_v22 = vpack.c.bf16 %v111_v20, %v110_v19  ;;  %v255_v24 = vld [vmem:[#allocation9 + $0x38] sm:$0xff]  ;;  %v113_v26 = vld [vmem:[#allocation7 + $0x48] sm:$0xff]  ;;  %v120_v27 = vld [vmem:[#allocation4] sm:$0xff] }
  0x60   :  { %2348 = vmatprep.mubr.f32.mxu0 %v120_v27  ;;  %v3853_v28 = vpack.c.bf16 %v255_v24, %v254_v23  ;;  %v3015_v29 = vpack.c.bf16 %v113_v26, %v112_v25  ;;  %v256_v30 = vld [vmem:[#allocation9 + $0x40] sm:$0xff]  ;;  %v257_v31 = vld [vmem:[#allocation9 + $0x48] sm:$0xff]  ;;  %v114_v32 = vld [vmem:[#allocation7 + $0x50] sm:$0xff]  ;;  %p3667_p1 = por %p3666_p0, %p3665_p13 }
  0x61   :  { %v115_v33 = vld [vmem:[#allocation7 + $0x58] sm:$0xff]  ;;  %v3857_v34 = vpack.c.bf16 %v257_v31, %v256_v30  ;;  %v258_v36 = vld [vmem:[#allocation9 + $0x50] sm:$0xff]  ;;  %v116_v38 = vld [vmem:[#allocation7 + $0x60] sm:$0xff] }
  0x62   :  { %3006 = vmatpush3.bf16.msra.mxu0 %v3003_v10  ;;  %3036 = vmatpush3.bf16.msra.mxu1 %v3845_v15  ;;  %v3019_v35 = vpack.c.bf16 %v115_v33, %v114_v32  ;;  %v259_v37 = vld [vmem:[#allocation9 + $0x58] sm:$0xff]  ;;  %v117_v39 = vld [vmem:[#allocation7 + $0x68] sm:$0xff]  ;;  %v260_v42 = vld [vmem:[#allocation9 + $0x60] sm:$0xff]  ;;  %p3668_p2 = pnand %p3667_p1, %p3661_p12 }
  0x63   :  { %3008 = vmatprep.subr.bf16.mxu0 %v3007_v16  ;;  %3037 = vmatprep.subr.bf16.mxu1 %v3697_v0  ;;  %v3861_v40 = vpack.c.bf16 %v259_v37, %v258_v36  ;;  %v3023_v41 = vpack.c.bf16 %v117_v39, %v116_v38  ;;  %v261_v43 = vld [vmem:[#allocation9 + $0x68] sm:$0xff]  ;;  %v118_v44 = vld [vmem:[#allocation7 + $0x70] sm:$0xff]  ;;  %v119_v45 = vld [vmem:[#allocation7 + $0x78] sm:$0xff] }
  0x64   :  { %v3865_v46 = vpack.c.bf16 %v261_v43, %v260_v42  ;;  %v3027_v47 = vpack.c.bf16 %v119_v45, %v118_v44  ;;  %v262_v48 = vld [vmem:[#allocation9 + $0x70] sm:$0xff]  ;;  %v263_v49 = vld [vmem:[#allocation9 + $0x78] sm:$0xff]  ;;  %v121_v51 = vld [vmem:[#allocation4 + $0x8] sm:$0xff] }
  0x65   :  { %v3869_v50 = vpack.c.bf16 %v263_v49, %v262_v48  ;;  %v264_v52 = vld [vmem:[#allocation10] sm:$0xff]  ;;  %vm3916_vm3 = vmand %vm100_vm1, %vm101_vm2  ;;  %v122_v4 = vld [vmem:[#allocation4 + $0x10] sm:$0xff] }
  0x66   :  { %3010 = vmatpush3.bf16.msra.mxu0 %v3007_v16  ;;  %3039 = vmatpush3.bf16.msra.mxu1 %v3849_v21  ;;  %v3912_v55 = vld [vmem:[%s4393_s3] ss:$0 sm:$0xff]  ;;  %v3923_v63 = vsel %vm3916_vm3, 1.0, %v3700_v62  ;;  %v123_v6 = vld [vmem:[#allocation4 + $0x18] sm:$0xff]  ;;  %v125_v10 = vld [vmem:[#allocation4 + $0x28] sm:$0xff] }
  0x67   :  { %3012 = vmatprep.subr.bf16.mxu0 %v3011_v22  ;;  %3040 = vmatprep.subr.bf16.mxu1 %v3697_v0  ;;  %v124_v8 = vld [vmem:[#allocation4 + $0x20] sm:$0xff]  ;;  %v126_v12 = vld [vmem:[#allocation4 + $0x30] sm:$0xff]  ;;  %v127_v14 = vld [vmem:[#allocation4 + $0x38] sm:$0xff] }
  0x68   :  { %v265_v17 = vld [vmem:[%s4395_s5] sm:$0xff] }
  0x69   :  { %v1978_v57 = vld [vmem:[%s4397_s7] ss:$0 sm:$0xff] }
  0x6a   :  { %3014 = vmatpush3.bf16.msra.mxu0 %v3011_v22  ;;  %3042 = vmatpush3.bf16.msra.mxu1 %v3853_v28 }
  0x6b   :  { %3016 = vmatprep.subr.bf16.mxu0 %v3015_v29  ;;  %3043 = vmatprep.subr.bf16.mxu1 %v3697_v0 }
  0x6e   :  { %3018 = vmatpush3.bf16.msra.mxu0 %v3015_v29  ;;  %3045 = vmatpush3.bf16.msra.mxu1 %v3857_v34 }
  0x6f   :  { %3020 = vmatprep.subr.bf16.mxu0 %v3019_v35  ;;  %3046 = vmatprep.subr.bf16.mxu1 %v3697_v0 }
  0x72   :  { %3022 = vmatpush3.bf16.msra.mxu0 %v3019_v35  ;;  %3048 = vmatpush3.bf16.msra.mxu1 %v3861_v40 }
  0x73   :  { %3024 = vmatprep.subr.bf16.mxu0 %v3023_v41  ;;  %3049 = vmatprep.subr.bf16.mxu1 %v3697_v0 }
  0x76   :  { %3026 = vmatpush3.bf16.msra.mxu0 %v3023_v41  ;;  %3051 = vmatpush3.bf16.msra.mxu1 %v3865_v46 }
  0x77   :  { %3028 = vmatprep.subr.bf16.mxu0 %v3027_v47  ;;  %3052 = vmatprep.subr.bf16.mxu1 %v3697_v0 }
  0x7a   :  { %3030 = vmatpush3.bf16.msra.mxu0 %v3027_v47  ;;  %3054 = vmatpush3.bf16.msra.mxu1 %v3869_v50 }
  0x7b   :  { %3055 = vmatprep.subr.bf16.mxu0 %v3697_v0  ;;  %3079 = vmatprep.subr.bf16.mxu1 %v3697_v0 }
  0x7d   :  { %2349 = vmatmul.mubr.f32.vlgmr.msra.gmra.mrb[0].mxu0 %v121_v51  ;;  %2393 = vmatmul.mubr.f32.vlgmr.msra.gmra.mrb[0].mxu1 %v264_v52 }
  0x7e   :  { %3057 = vmatpush3.bf16.msra.mxu0 %v3842_v9  ;;  %3081 = vmatpush3.bf16.msra.mxu1 %v3842_v9 }
  0x7f   :  { %3058 = vmatprep.subr.bf16.mxu0 %v3697_v0  ;;  %3082 = vmatprep.subr.bf16.mxu1 %v3697_v0 }
  0x80   :  { %2462 = vmatprep.mubr.msk.f32.mxu1 %vm3698_vm0, %v3699_v1  ;;  %2351 = vmatprep.mubr.f32.mxu0 %v122_v4 }
  0x81   :  { %2352 = vmatmul.mubr.f32.gmra.mrb[2].mxu0 %v123_v6 }
  0x82   :  { %3060 = vmatpush3.bf16.msra.mxu0 %v3845_v15  ;;  %3084 = vmatpush3.bf16.msra.mxu1 %v3845_v15 }
  0x83   :  { %3061 = vmatprep.subr.bf16.mxu0 %v3697_v0  ;;  %3085 = vmatprep.subr.bf16.mxu1 %v3697_v0 }
  0x84   :  { %2354 = vmatprep.mubr.f32.mxu0 %v124_v8 }
  0x85   :  { %2355 = vmatmul.mubr.f32.gmra.mrb[4].mxu0 %v125_v10 }
  0x86   :  { %3063 = vmatpush3.bf16.msra.mxu0 %v3849_v21  ;;  %3087 = vmatpush3.bf16.msra.mxu1 %v3849_v21 }
  0x87   :  { %3064 = vmatprep.subr.bf16.mxu0 %v3697_v0  ;;  %3088 = vmatprep.subr.bf16.mxu1 %v3697_v0 }
  0x88   :  { %2357 = vmatprep.mubr.f32.mxu0 %v126_v12 }
  0x89   :  { %2358 = vmatmul.mubr.f32.gmra.mrb[6].mxu0 %v127_v14 }
  0x8a   :  { %3066 = vmatpush3.bf16.msra.mxu0 %v3853_v28  ;;  %3090 = vmatpush3.bf16.msra.mxu1 %v3853_v28 }
  0x8b   :  { %3067 = vmatprep.subr.bf16.mxu0 %v3697_v0  ;;  %3091 = vmatprep.subr.bf16.mxu1 %v3697_v0 }
  0x8c   :  { %2427 = vmatprep.mubr.msk.f32.mxu0 %vm3698_vm0, %v3699_v1 }
  0x8e   :  { %3069 = vmatpush3.bf16.msra.mxu0 %v3857_v34  ;;  %3093 = vmatpush3.bf16.msra.mxu1 %v3857_v34 }
  0x8f   :  { %3070 = vmatprep.subr.bf16.mxu0 %v3697_v0  ;;  %3094 = vmatprep.subr.bf16.mxu1 %v3697_v0 }
  0x92   :  { %3072 = vmatpush3.bf16.msra.mxu0 %v3861_v40  ;;  %3096 = vmatpush3.bf16.msra.mxu1 %v3861_v40 }
  0x93   :  { %3073 = vmatprep.subr.bf16.mxu0 %v3697_v0  ;;  %3097 = vmatprep.subr.bf16.mxu1 %v3697_v0 }
  0x96   :  { %3075 = vmatpush3.bf16.msra.mxu0 %v3865_v46  ;;  %3099 = vmatpush3.bf16.msra.mxu1 %v3865_v46 }
  0x97   :  { %3076 = vmatprep.subr.bf16.mxu0 %v3697_v0  ;;  %3100 = vmatprep.subr.bf16.mxu1 %v3697_v0 }
  0x9a   :  { %3078 = vmatpush3.bf16.msra.mxu0 %v3869_v50  ;;  %3102 = vmatpush3.bf16.msra.mxu1 %v3869_v50 }
  0x9b   :  { %3103 = vmatprep.subr.bf16.mxu0 %v3697_v0  ;;  %3127 = vmatprep.subr.bf16.mxu1 %v3697_v0 }
 0x150   :  { %v3914_v56 = vpop.f32.mrb[0].mxu0  ;;  %v333_v58 = vpop.f32.mrb[0].mxu1 }
 0x151   :  { %v201_v59 = vpop.f32.mrb[1].mxu0  ;;  %v2394_v60 = vpop.f32.mrb[1].mxu1  ;;  %v207_v33 = vadd.f32 %v3914_v56, %v3912_v55 }
 0x152   :  { %v202_v61 = vadd.f32 %v3912_v55, %v201_v59 }
 0x154   :  { %v337_v2 = vadd.f32 %v333_v58, %v202_v61  ;;  %v3957_v26 = vpop.f32.mrb[2].mxu0 }
 0x155   :  { %v211_v27 = vpop.f32.mrb[3].mxu0 }
 0x156   :  { %v338_v3 = vmul.f32 %v337_v2, %v3923_v63  ;;  %v212_v54 = vadd.f32 %v3912_v55, %v211_v27 }
 0x158   :  { %3486 = vtanh.f32 %v338_v3  ;;  %v3959_v29 = vpop.f32.mrb[4].mxu0 }
 0x159   :  { %v3961_v30 = vpop.f32.mrb[5].mxu0 }
 0x15c   :  { %v3963_v31 = vpop.f32.mrb[6].mxu0 }
 0x15d   :  { %v3965_v32 = vpop.f32.mrb[7].mxu0 }
 0x162   :  { %v3487_v5 = vpop.eup %3486 }
 0x163   :  { %v340_v7 = vadd.f32 1.0, %v3487_v5 }
 0x165   :  { %v341_v11 = vmul.f32 0.5, %v340_v7 }
 0x167   :  { %v342_v13 = vsel %vm3916_vm3, %v3487_v5, %v341_v11 }
 0x168   :  { %347 = vrot.lane.b32.xlu1 %v342_v13, %s3701_s18  ;;  %343 = vrot.lane.b32.xlu0 %v342_v13, %s3702_s30 }
 0x16c   :  { %345 = vrot.lane.b32.xlu0 %v342_v13, %s3703_s22 }
 0x1da   :  { %v344_v16 = vpop.permute.xlu0 %343  ;;  %v348_v24 = vpop.permute.xlu1 %347 }
 0x1db   :  { %v349_v19 = vmul.f32 %v344_v16, %v265_v17 }
 0x1de   :  { %v346_v18 = vpop.permute.xlu0 %345 }
 0x1df   :  { %v350_v20 = vmul.f32 %v346_v18, %v342_v13  ;;  %v217_v13 = vadd.f32 %v3957_v26, %v3912_v55 }
 0x1e1   :  { %v351_v22 = vadd.f32 %v350_v20, %v349_v19 }
 0x1e3   :  { %3488 = vtanh.f32 %v351_v22 }
 0x1ed   :  { %v3489_v23 = vpop.eup %3488 }
 0x1ee   :  { %v3936_v25 = vmul.f32 %v3489_v23, %v348_v24 }
 0x1f0   :  { %2428 = vmatmul.mubr.f32.vlgmr.msra.gmra.mrb[8].mxu0 %v3936_v25 }
 0x1f1   :  { %3105 = vmatpush3.bf16.msra.mxu0 %v3842_v9  ;;  %2497 = vmatprep.mubr.msk.f32.mxu0 %vm3698_vm0, %v3699_v1 }
 0x1f2   :  { %3106 = vmatprep.subr.bf16.mxu0 %v3697_v0 }
 0x1f5   :  { %3108 = vmatpush3.bf16.msra.mxu0 %v3845_v15 }
 0x1f6   :  { %3109 = vmatprep.subr.bf16.mxu0 %v3697_v0 }
 0x1f9   :  { %3111 = vmatpush3.bf16.msra.mxu0 %v3849_v21 }
 0x1fa   :  { %3112 = vmatprep.subr.bf16.mxu0 %v3697_v0 }
 0x1fd   :  { %3114 = vmatpush3.bf16.msra.mxu0 %v3853_v28 }
 0x1fe   :  { %3115 = vmatprep.subr.bf16.mxu0 %v3697_v0 }
 0x201   :  { %3117 = vmatpush3.bf16.msra.mxu0 %v3857_v34 }
 0x202   :  { %3118 = vmatprep.subr.bf16.mxu0 %v3697_v0 }
 0x205   :  { %3120 = vmatpush3.bf16.msra.mxu0 %v3861_v40 }
 0x206   :  { %3121 = vmatprep.subr.bf16.mxu0 %v3697_v0 }
 0x209   :  { %3123 = vmatpush3.bf16.msra.mxu0 %v3865_v46 }
 0x20a   :  { %3124 = vmatprep.subr.bf16.mxu0 %v3697_v0 }
 0x20d   :  { %3126 = vmatpush3.bf16.msra.mxu0 %v3869_v50 }
 0x20e   :  { %3151 = vmatprep.subr.bf16.mxu0 %v3697_v0 }
 0x2c3   :  { %v423_v35 = vpop.f32.mrb[8].mxu0 }
 0x2c4   :  { %v427_v36 = vadd.f32 %v423_v35, %v207_v33  ;;  %v2429_v37 = vpop.f32.mrb[9].mxu0 }
 0x2c6   :  { %v428_v38 = vmul.f32 %v427_v36, %v3923_v63 }
 0x2c8   :  { %3490 = vtanh.f32 %v428_v38 }
 0x2d2   :  { %v3491_v39 = vpop.eup %3490 }
 0x2d3   :  { %v430_v41 = vadd.f32 1.0, %v3491_v39 }
 0x2d5   :  { %v431_v42 = vmul.f32 0.5, %v430_v41 }
 0x2d7   :  { %v432_v43 = vsel %vm3916_vm3, %v3491_v39, %v431_v42  ;;  %v222_v39 = vadd.f32 %v3912_v55, %v3961_v30 }
 0x2d8   :  { %435 = vrot.lane.b32.xlu0 %v432_v43, %s3703_s22  ;;  %433 = vrot.lane.b32.xlu1 %v432_v43, %s3702_s30 }
 0x2dc   :  { %437 = vrot.lane.b32.xlu1 %v432_v43, %s3701_s18 }
 0x34a   :  { %v436_v44 = vpop.permute.xlu0 %435  ;;  %v434_v45 = vpop.permute.xlu1 %433 }
 0x34b   :  { %v440_v47 = vmul.f32 %v436_v44, %v432_v43  ;;  %v439_v48 = vmul.f32 %v434_v45, %v351_v22 }
 0x34d   :  { %v441_v49 = vadd.f32 %v440_v47, %v439_v48 }
 0x34e   :  { %v438_v52 = vpop.permute.xlu1 %437 }
 0x34f   :  { %3492 = vtanh.f32 %v441_v49 }
 0x359   :  { %v3493_v51 = vpop.eup %3492 }
 0x35a   :  { %v3975_v53 = vmul.f32 %v3493_v51, %v438_v52 }
 0x35c   :  { %2463 = vmatmul.mubr.f32.vlgmr.msra.gmra.mrb[2].mxu1 %v3975_v53 }
 0x35d   :  { %3129 = vmatpush3.bf16.msra.mxu1 %v3842_v9  ;;  %2532 = vmatprep.mubr.msk.f32.mxu1 %vm3698_vm0, %v3699_v1 }
 0x35e   :  { %3130 = vmatprep.subr.bf16.mxu1 %v3697_v0 }
 0x361   :  { %3132 = vmatpush3.bf16.msra.mxu1 %v3845_v15 }
 0x362   :  { %3133 = vmatprep.subr.bf16.mxu1 %v3697_v0 }
 0x365   :  { %3135 = vmatpush3.bf16.msra.mxu1 %v3849_v21 }
 0x366   :  { %3136 = vmatprep.subr.bf16.mxu1 %v3697_v0 }
 0x369   :  { %3138 = vmatpush3.bf16.msra.mxu1 %v3853_v28 }
 0x36a   :  { %3139 = vmatprep.subr.bf16.mxu1 %v3697_v0 }
 0x36d   :  { %3141 = vmatpush3.bf16.msra.mxu1 %v3857_v34 }
 0x36e   :  { %3142 = vmatprep.subr.bf16.mxu1 %v3697_v0 }
 0x371   :  { %3144 = vmatpush3.bf16.msra.mxu1 %v3861_v40 }
 0x372   :  { %3145 = vmatprep.subr.bf16.mxu1 %v3697_v0 }
 0x375   :  { %3147 = vmatpush3.bf16.msra.mxu1 %v3865_v46 }
 0x376   :  { %3148 = vmatprep.subr.bf16.mxu1 %v3697_v0 }
 0x379   :  { %3150 = vmatpush3.bf16.msra.mxu1 %v3869_v50 }
 0x37a   :  { %3175 = vmatprep.subr.bf16.mxu1 %v3697_v0 }
 0x42f   :  { %v514_v56 = vpop.f32.mrb[2].mxu1 }
 0x430   :  { %v518_v58 = vadd.f32 %v514_v56, %v212_v54  ;;  %v2464_v59 = vpop.f32.mrb[3].mxu1 }
 0x432   :  { %v519_v60 = vmul.f32 %v518_v58, %v3923_v63 }
 0x434   :  { %3494 = vtanh.f32 %v519_v60 }
 0x43e   :  { %v3495_v61 = vpop.eup %3494 }
 0x43f   :  { %v521_v62 = vadd.f32 1.0, %v3495_v61 }
 0x441   :  { %v522_v2 = vmul.f32 0.5, %v521_v62 }
 0x443   :  { %v523_v3 = vsel %vm3916_vm3, %v3495_v61, %v522_v2  ;;  %v994_v2 = vld [vmem:[#allocation7 + $0x88] sm:$0xff] }
 0x444   :  { %526 = vrot.lane.b32.xlu1 %v523_v3, %s3703_s22  ;;  %524 = vrot.lane.b32.xlu0 %v523_v3, %s3702_s30 }
 0x448   :  { %528 = vrot.lane.b32.xlu0 %v523_v3, %s3701_s18 }
 0x4b6   :  { %v527_v4 = vpop.permute.xlu1 %526  ;;  %v525_v5 = vpop.permute.xlu0 %524 }
 0x4b7   :  { %v531_v6 = vmul.f32 %v527_v4, %v523_v3  ;;  %v530_v7 = vmul.f32 %v525_v5, %v441_v49 }
 0x4b9   :  { %v532_v8 = vadd.f32 %v531_v6, %v530_v7 }
 0x4ba   :  { %v529_v11 = vpop.permute.xlu0 %528 }
 0x4bb   :  { %3496 = vtanh.f32 %v532_v8 }
 0x4c5   :  { %v3497_v10 = vpop.eup %3496 }
 0x4c6   :  { %v4003_v12 = vmul.f32 %v3497_v10, %v529_v11  ;;  %v996_v10 = vld [vmem:[#allocation7 + $0x98] sm:$0xff] }
 0x4c8   :  { %2498 = vmatmul.mubr.f32.vlgmr.msra.gmra.mrb[10].mxu0 %v4003_v12 }
 0x4c9   :  { %3153 = vmatpush3.bf16.msra.mxu0 %v3842_v9  ;;  %2567 = vmatprep.mubr.msk.f32.mxu0 %vm3698_vm0, %v3699_v1 }
 0x4ca   :  { %3154 = vmatprep.subr.bf16.mxu0 %v3697_v0 }
 0x4cd   :  { %3156 = vmatpush3.bf16.msra.mxu0 %v3845_v15 }
 0x4ce   :  { %3157 = vmatprep.subr.bf16.mxu0 %v3697_v0 }
 0x4d1   :  { %3159 = vmatpush3.bf16.msra.mxu0 %v3849_v21 }
 0x4d2   :  { %3160 = vmatprep.subr.bf16.mxu0 %v3697_v0 }
 0x4d5   :  { %3162 = vmatpush3.bf16.msra.mxu0 %v3853_v28 }
 0x4d6   :  { %3163 = vmatprep.subr.bf16.mxu0 %v3697_v0 }
 0x4d9   :  { %3165 = vmatpush3.bf16.msra.mxu0 %v3857_v34 }
 0x4da   :  { %3166 = vmatprep.subr.bf16.mxu0 %v3697_v0 }
 0x4dd   :  { %3168 = vmatpush3.bf16.msra.mxu0 %v3861_v40 }
 0x4de   :  { %3169 = vmatprep.subr.bf16.mxu0 %v3697_v0 }
 0x4e1   :  { %3171 = vmatpush3.bf16.msra.mxu0 %v3865_v46 }
 0x4e2   :  { %3172 = vmatprep.subr.bf16.mxu0 %v3697_v0 }
 0x4e5   :  { %3174 = vmatpush3.bf16.msra.mxu0 %v3869_v50 }
 0x4e6   :  { %3199 = vmatprep.subr.bf16.mxu0 %v3697_v0 }
 0x59b   :  { %v605_v14 = vpop.f32.mrb[10].mxu0 }
 0x59c   :  { %v609_v16 = vadd.f32 %v605_v14, %v217_v13  ;;  %v2499_v17 = vpop.f32.mrb[11].mxu0 }
 0x59d   :  { %v997_v17 = vld [vmem:[#allocation7 + $0xa0] sm:$0xff] }
 0x59e   :  { %v610_v18 = vmul.f32 %v609_v16, %v3923_v63 }
 0x5a0   :  { %3498 = vtanh.f32 %v610_v18  ;;  %v998_v18 = vld [vmem:[#allocation7 + $0xa8] sm:$0xff] }
 0x5aa   :  { %v3499_v19 = vpop.eup %3498 }
 0x5ab   :  { %v612_v20 = vadd.f32 1.0, %v3499_v19 }
 0x5ad   :  { %v613_v22 = vmul.f32 0.5, %v612_v20  ;;  %v999_v20 = vld [vmem:[#allocation7 + $0xb0] sm:$0xff] }
 0x5af   :  { %v614_v23 = vsel %vm3916_vm3, %v3499_v19, %v613_v22  ;;  %v3231_v19 = vpack.c.bf16 %v998_v18, %v997_v17  ;;  %v1000_v22 = vld [vmem:[#allocation7 + $0xb8] sm:$0xff] }
 0x5b0   :  { %617 = vrot.lane.b32.xlu0 %v614_v23, %s3703_s22  ;;  %615 = vrot.lane.b32.xlu1 %v614_v23, %s3702_s30 }
 0x5b4   :  { %619 = vrot.lane.b32.xlu1 %v614_v23, %s3701_s18 }
 0x622   :  { %v618_v24 = vpop.permute.xlu0 %617  ;;  %v616_v26 = vpop.permute.xlu1 %615 }
 0x623   :  { %v622_v27 = vmul.f32 %v618_v24, %v614_v23  ;;  %v621_v33 = vmul.f32 %v616_v26, %v532_v8  ;;  %v995_v8 = vld [vmem:[#allocation7 + $0x90] sm:$0xff]  ;;  %v3235_v23 = vpack.c.bf16 %v1000_v22, %v999_v20  ;;  %v1001_v24 = vld [vmem:[#allocation7 + $0xc0] sm:$0xff]  ;;  %v1002_v26 = vld [vmem:[#allocation7 + $0xc8] sm:$0xff] }
 0x624   :  { %v3227_v16 = vpack.c.bf16 %v996_v10, %v995_v8  ;;  %v1151_v8 = vld [vmem:[#allocation9 + $0xe0] sm:$0xff]  ;;  %v1152_v10 = vld [vmem:[#allocation9 + $0xe8] sm:$0xff] }
 0x625   :  { %v623_v35 = vadd.f32 %v622_v27, %v621_v33  ;;  %v3239_v27 = vpack.c.bf16 %v1002_v26, %v1001_v24  ;;  %v1003_v33 = vld [vmem:[#allocation7 + $0xd0] sm:$0xff] }
 0x626   :  { %v620_v37 = vpop.permute.xlu1 %619 }
 0x627   :  { %3500 = vtanh.f32 %v623_v35 }
 0x631   :  { %v3501_v36 = vpop.eup %3500 }
 0x632   :  { %v4032_v38 = vmul.f32 %v3501_v36, %v620_v37  ;;  %v1005_v37 = vld [vmem:[#allocation7 + $0xe0] sm:$0xff] }
 0x634   :  { %2533 = vmatmul.mubr.f32.vlgmr.msra.gmra.mrb[4].mxu1 %v4032_v38 }
 0x635   :  { %3177 = vmatpush3.bf16.msra.mxu1 %v3842_v9  ;;  %2602 = vmatprep.mubr.msk.f32.mxu1 %vm3698_vm0, %v3699_v1 }
 0x636   :  { %3178 = vmatprep.subr.bf16.mxu1 %v3697_v0 }
 0x639   :  { %3180 = vmatpush3.bf16.msra.mxu1 %v3845_v15 }
 0x63a   :  { %3181 = vmatprep.subr.bf16.mxu1 %v3697_v0 }
 0x63d   :  { %3183 = vmatpush3.bf16.msra.mxu1 %v3849_v21 }
 0x63e   :  { %3184 = vmatprep.subr.bf16.mxu1 %v3697_v0 }
 0x641   :  { %3186 = vmatpush3.bf16.msra.mxu1 %v3853_v28 }
 0x642   :  { %3187 = vmatprep.subr.bf16.mxu1 %v3697_v0 }
 0x645   :  { %3189 = vmatpush3.bf16.msra.mxu1 %v3857_v34 }
 0x646   :  { %3190 = vmatprep.subr.bf16.mxu1 %v3697_v0 }
 0x649   :  { %3192 = vmatpush3.bf16.msra.mxu1 %v3861_v40 }
 0x64a   :  { %3193 = vmatprep.subr.bf16.mxu1 %v3697_v0 }
 0x64d   :  { %3195 = vmatpush3.bf16.msra.mxu1 %v3865_v46 }
 0x64e   :  { %3196 = vmatprep.subr.bf16.mxu1 %v3697_v0 }
 0x651   :  { %3198 = vmatpush3.bf16.msra.mxu1 %v3869_v50 }
 0x707   :  { %v696_v41 = vpop.f32.mrb[4].mxu1 }
 0x708   :  { %v700_v42 = vadd.f32 %v696_v41, %v222_v39  ;;  %v2534_v43 = vpop.f32.mrb[5].mxu1  ;;  %v1006_v39 = vld [vmem:[#allocation7 + $0xe8] sm:$0xff]  ;;  %v1007_v41 = vld [vmem:[#allocation7 + $0xf0] sm:$0xff] }
 0x70a   :  { %v701_v44 = vmul.f32 %v700_v42, %v3923_v63  ;;  %v1008_v42 = vld [vmem:[#allocation7 + $0xf8] sm:$0xff] }
 0x70b   :  { %v3251_v43 = vpack.c.bf16 %v1008_v42, %v1007_v41 }
 0x70c   :  { %3502 = vtanh.f32 %v701_v44  ;;  %v232_v44 = vadd.f32 %v3912_v55, %v3965_v32  ;;  %v1141_v32 = vld [vmem:[#allocation9 + $0x90] sm:$0xff] }
 0x716   :  { %v3503_v45 = vpop.eup %3502 }
 0x717   :  { %v703_v47 = vadd.f32 1.0, %v3503_v45 }
 0x719   :  { %v704_v48 = vmul.f32 0.5, %v703_v47 }
 0x71b   :  { %v705_v49 = vsel %vm3916_vm3, %v3503_v45, %v704_v48 }
 0x71c   :  { %708 = vrot.lane.b32.xlu1 %v705_v49, %s3703_s22  ;;  %706 = vrot.lane.b32.xlu0 %v705_v49, %s3702_s30 }
 0x720   :  { %710 = vrot.lane.b32.xlu0 %v705_v49, %s3701_s18 }
 0x78e   :  { %v709_v51 = vpop.permute.xlu1 %708  ;;  %v707_v30 = vpop.permute.xlu0 %706 }
 0x78f   :  { %v713_v52 = vmul.f32 %v709_v51, %v705_v49  ;;  %v712_v54 = vmul.f32 %v707_v30, %v623_v35  ;;  %v1004_v35 = vld [vmem:[#allocation7 + $0xd8] sm:$0xff] }
 0x790   :  { %v3243_v36 = vpack.c.bf16 %v1004_v35, %v1003_v33 }
 0x791   :  { %v714_v56 = vadd.f32 %v713_v52, %v712_v54 }
 0x792   :  { %v711_v59 = vpop.permute.xlu0 %710 }
 0x793   :  { %3504 = vtanh.f32 %v714_v56 }
 0x79d   :  { %v3505_v58 = vpop.eup %3504 }
 0x79e   :  { %v4060_v60 = vmul.f32 %v3505_v58, %v711_v59  ;;  %v1143_v59 = vld [vmem:[#allocation9 + $0xa0] sm:$0xff] }
 0x7a0   :  { %2568 = vmatmul.mubr.f32.vlgmr.msra.gmra.mrb[12].mxu0 %v4060_v60 }
 0x7a1   :  { %3201 = vmatpush3.bf16.msra.mxu0 %v3842_v9  ;;  %2637 = vmatprep.mubr.msk.f32.mxu0 %vm3698_vm0, %v3699_v1  ;;  %v227_v9 = vadd.f32 %v3959_v29, %v3912_v55 }
 0x7a2   :  { %3202 = vmatprep.subr.bf16.mxu0 %v3697_v0 }
 0x7a5   :  { %3204 = vmatpush3.bf16.msra.mxu0 %v3845_v15 }
 0x7a6   :  { %3205 = vmatprep.subr.bf16.mxu0 %v3697_v0 }
 0x7a9   :  { %3207 = vmatpush3.bf16.msra.mxu0 %v3849_v21 }
 0x7aa   :  { %3208 = vmatprep.subr.bf16.mxu0 %v3697_v0 }
 0x7ad   :  { %3210 = vmatpush3.bf16.msra.mxu0 %v3853_v28 }
 0x7ae   :  { %3211 = vmatprep.subr.bf16.mxu0 %v3697_v0 }
 0x7b1   :  { %3213 = vmatpush3.bf16.msra.mxu0 %v3857_v34 }
 0x7b2   :  { %3214 = vmatprep.subr.bf16.mxu0 %v3697_v0 }
 0x7b5   :  { %3216 = vmatpush3.bf16.msra.mxu0 %v3861_v40 }
 0x7b6   :  { %3217 = vmatprep.subr.bf16.mxu0 %v3697_v0 }
 0x7b9   :  { %3219 = vmatpush3.bf16.msra.mxu0 %v3865_v46 }
 0x7ba   :  { %3220 = vmatprep.subr.bf16.mxu0 %v3697_v0 }
 0x7bd   :  { %3222 = vmatpush3.bf16.msra.mxu0 %v3869_v50  ;;  %v993_v50 = vld [vmem:[#allocation7 + $0x80] sm:$0xff] }
 0x7be   :  { %3255 = vmatprep.subr.bf16.mxu0 %v3697_v0  ;;  %v3223_v3 = vpack.c.bf16 %v994_v2, %v993_v50  ;;  %v1148_v50 = vld [vmem:[#allocation9 + $0xc8] sm:$0xff] }
 0x7c0   :  { %3224 = vmatprep.subr.bf16.mxu1 %v3223_v3 }
 0x873   :  { %v787_v15 = vpop.f32.mrb[12].mxu0 }
 0x874   :  { %v791_v21 = vadd.f32 %v787_v15, %v227_v9  ;;  %v2569_v28 = vpop.f32.mrb[13].mxu0 }
 0x875   :  { %v1145_v28 = vld [vmem:[#allocation9 + $0xb0] sm:$0xff] }
 0x876   :  { %v792_v34 = vmul.f32 %v791_v21, %v3923_v63 }
 0x878   :  { %3506 = vtanh.f32 %v792_v34  ;;  %v1146_v34 = vld [vmem:[#allocation9 + $0xb8] sm:$0xff] }
 0x882   :  { %v3507_v40 = vpop.eup %3506 }
 0x883   :  { %v794_v61 = vadd.f32 1.0, %v3507_v40 }
 0x885   :  { %v795_v62 = vmul.f32 0.5, %v794_v61  ;;  %v4124_v61 = vpack.c.bf16 %v1146_v34, %v1145_v28 }
 0x887   :  { %v796_v46 = vsel %vm3916_vm3, %v3507_v40, %v795_v62 }
 0x888   :  { %799 = vrot.lane.b32.xlu0 %v796_v46, %s3703_s22  ;;  %797 = vrot.lane.b32.xlu1 %v796_v46, %s3702_s30 }
 0x88c   :  { %801 = vrot.lane.b32.xlu1 %v796_v46, %s3701_s18 }
 0x8fa   :  { %v800_v29 = vpop.permute.xlu0 %799  ;;  %v798_v4 = vpop.permute.xlu1 %797 }
 0x8fb   :  { %v804_v5 = vmul.f32 %v800_v29, %v796_v46  ;;  %v803_v6 = vmul.f32 %v798_v4, %v714_v56  ;;  %v1142_v56 = vld [vmem:[#allocation9 + $0x98] sm:$0xff]  ;;  %v1147_v46 = vld [vmem:[#allocation9 + $0xc0] sm:$0xff]  ;;  %v1149_v4 = vld [vmem:[#allocation9 + $0xd0] sm:$0xff] }
 0x8fc   :  { %v4110_v58 = vpack.c.bf16 %v1142_v56, %v1141_v32  ;;  %v1977_v56 = vld [vmem:[%s4395_s5 + $0x8] sm:$0xff] }
 0x8fd   :  { %v4089_v7 = vadd.f32 %v804_v5, %v803_v6  ;;  %v1150_v5 = vld [vmem:[#allocation9 + $0xd8] sm:$0xff] }
 0x8fe   :  { %v802_v13 = vpop.permute.xlu1 %801  ;;  %v4138_v6 = vpack.c.bf16 %v1150_v5, %v1149_v4 }
 0x8ff   :  { %3508 = vtanh.f32 %v4089_v7 }
 0x909   :  { %v3509_v11 = vpop.eup %3508 }
 0x90a   :  { %v807_v14 = vmul.f32 %v3509_v11, %v802_v13  ;;  %v4142_v11 = vpack.c.bf16 %v1152_v10, %v1151_v8  ;;  %v1153_v13 = vld [vmem:[#allocation9 + $0xf0] sm:$0xff] }
 0x90c   :  { %2603 = vmatmul.mubr.f32.vlgmr.msra.gmra.mrb[6].mxu1 %v807_v14 }
 0x90d   :  { %3226 = vmatpush3.bf16.msra.mxu1 %v3223_v3  ;;  %2672 = vmatprep.mubr.f32.mxu1 %v3936_v25  ;;  %v3247_v25 = vpack.c.bf16 %v1006_v39, %v1005_v37  ;;  %v4132_v3 = vpack.c.bf16 %v1148_v50, %v1147_v46 }
 0x90e   :  { %3228 = vmatprep.subr.bf16.mxu1 %v3227_v16 }
 0x911   :  { %3230 = vmatpush3.bf16.msra.mxu1 %v3227_v16 }
 0x912   :  { %3232 = vmatprep.subr.bf16.mxu1 %v3231_v19 }
 0x915   :  { %3234 = vmatpush3.bf16.msra.mxu1 %v3231_v19 }
 0x916   :  { %3236 = vmatprep.subr.bf16.mxu1 %v3235_v23 }
 0x919   :  { %3238 = vmatpush3.bf16.msra.mxu1 %v3235_v23 }
 0x91a   :  { %3240 = vmatprep.subr.bf16.mxu1 %v3239_v27 }
 0x91d   :  { %3242 = vmatpush3.bf16.msra.mxu1 %v3239_v27  ;;  %v237_v27 = vadd.f32 %v3963_v31, %v3912_v55  ;;  %v4200_v55 = vld [vmem:[%s4393_s3 + $0x1] ss:$0 sm:$0xff] }
 0x91e   :  { %3244 = vmatprep.subr.bf16.mxu1 %v3243_v36 }
 0x921   :  { %3246 = vmatpush3.bf16.msra.mxu1 %v3243_v36 }
 0x922   :  { %3248 = vmatprep.subr.bf16.mxu1 %v3247_v25 }
 0x925   :  { %3250 = vmatpush3.bf16.msra.mxu1 %v3247_v25 }
 0x926   :  { %3252 = vmatprep.subr.bf16.mxu1 %v3251_v43 }
 0x929   :  { %3254 = vmatpush3.bf16.msra.mxu1 %v3251_v43 }
 0x92a   :  { %3279 = vmatprep.subr.bf16.mxu1 %v3697_v0 }
 0x92c   :  { %2673 = vmatmul.mubr.f32.vlgmr.msra.gmra.mrb[8].mxu1 %v3975_v53 }
 0x92d   :  { %2675 = vmatprep.mubr.f32.mxu1 %v4003_v12  ;;  %v1139_v12 = vld [vmem:[#allocation9 + $0x80] sm:$0xff] }
 0x930   :  { %2676 = vmatmul.mubr.f32.gmra.mrb[10].mxu1 %v4032_v38  ;;  %v1140_v38 = vld [vmem:[#allocation9 + $0x88] sm:$0xff] }
 0x931   :  { %2678 = vmatprep.mubr.f32.mxu1 %v4060_v60  ;;  %v4105_v54 = vpack.c.bf16 %v1140_v38, %v1139_v12  ;;  %v1144_v60 = vld [vmem:[#allocation9 + $0xa8] sm:$0xff] }
 0x932   :  { %v4116_v15 = vpack.c.bf16 %v1144_v60, %v1143_v59 }
 0x933   :  { %3281 = vmatpush3.bf16.msra.mxu1 %v4105_v54 }
 0x934   :  { %2679 = vmatmul.mubr.f32.gmra.mrb[12].mxu1 %v807_v14  ;;  %3282 = vmatprep.subr.bf16.mxu1 %v3697_v0  ;;  %v1154_v14 = vld [vmem:[#allocation9 + $0xf8] sm:$0xff] }
 0x935   :  { %v4146_v16 = vpack.c.bf16 %v1154_v14, %v1153_v13 }
 0x937   :  { %3284 = vmatpush3.bf16.msra.mxu1 %v4110_v58 }
 0x938   :  { %3285 = vmatprep.subr.bf16.mxu1 %v3697_v0 }
 0x93b   :  { %3287 = vmatpush3.bf16.msra.mxu1 %v4116_v15 }
 0x93c   :  { %3288 = vmatprep.subr.bf16.mxu1 %v3697_v0 }
 0x93f   :  { %3290 = vmatpush3.bf16.msra.mxu1 %v4124_v61 }
 0x940   :  { %3291 = vmatprep.subr.bf16.mxu1 %v3697_v0 }
 0x943   :  { %3293 = vmatpush3.bf16.msra.mxu1 %v4132_v3 }
 0x944   :  { %3294 = vmatprep.subr.bf16.mxu1 %v3697_v0 }
 0x947   :  { %3296 = vmatpush3.bf16.msra.mxu1 %v4138_v6 }
 0x948   :  { %3297 = vmatprep.subr.bf16.mxu1 %v3697_v0 }
 0x94b   :  { %3299 = vmatpush3.bf16.msra.mxu1 %v4142_v11 }
 0x94c   :  { %3300 = vmatprep.subr.bf16.mxu1 %v3697_v0 }
 0x94f   :  { %3302 = vmatpush3.bf16.msra.mxu1 %v4146_v16 }
 0x950   :  { %3327 = vmatprep.subr.bf16.mxu1 %v3697_v0 }
 0x9df   :  { %v878_v45 = vpop.f32.mrb[6].mxu1 }
 0x9e0   :  { %v882_v47 = vadd.f32 %v878_v45, %v232_v44  ;;  %v2604_v48 = vpop.f32.mrb[7].mxu1 }
 0x9e2   :  { %v883_v49 = vmul.f32 %v882_v47, %v3923_v63 }
 0x9e4   :  { %3510 = vtanh.f32 %v883_v49 }
 0x9ee   :  { %v3511_v51 = vpop.eup %3510 }
 0x9ef   :  { %v885_v30 = vadd.f32 1.0, %v3511_v51 }
 0x9f1   :  { %v886_v52 = vmul.f32 0.5, %v885_v30 }
 0x9f3   :  { %v887_v53 = vsel %vm3916_vm3, %v3511_v51, %v886_v52 }
 0x9f4   :  { %890 = vrot.lane.b32.xlu1 %v887_v53, %s3703_s22  ;;  %888 = vrot.lane.b32.xlu0 %v887_v53, %s3702_s30 }
 0x9f8   :  { %892 = vrot.lane.b32.xlu0 %v887_v53, %s3701_s18 }
 0x9ff   :  { %v4114_v9 = vpop.f32.mrb[8].mxu1 }
 0xa00   :  { %v4118_v21 = vpop.f32.mrb[9].mxu1 }
 0xa01   :  { %v1092_v31 = vadd.f32 %v4200_v55, %v4118_v21 }
 0xa03   :  { %v4122_v40 = vpop.f32.mrb[10].mxu1 }
 0xa04   :  { %v4126_v62 = vpop.f32.mrb[11].mxu1 }
 0xa07   :  { %v4130_v2 = vpop.f32.mrb[12].mxu1 }
 0xa08   :  { %v4134_v29 = vpop.f32.mrb[13].mxu1 }
 0xa66   :  { %v891_v17 = vpop.permute.xlu1 %890  ;;  %v889_v18 = vpop.permute.xlu0 %888 }
 0xa67   :  { %v895_v19 = vmul.f32 %v891_v17, %v887_v53  ;;  %v894_v20 = vmul.f32 %v889_v18, %v4089_v7  ;;  %v1156_v7 = vld [vmem:[#allocation10 + $0x8] sm:$0xff]  ;;  %v1097_v17 = vadd.f32 %v4114_v9, %v4200_v55 }
 0xa69   :  { %v4151_v22 = vadd.f32 %v895_v19, %v894_v20 }
 0xa6a   :  { %v893_v24 = vpop.permute.xlu0 %892 }
 0xa6b   :  { %3512 = vtanh.f32 %v4151_v22 }
 0xa75   :  { %v3513_v23 = vpop.eup %3512 }
 0xa76   :  { %v898_v26 = vmul.f32 %v3513_v23, %v893_v24 }
 0xa78   :  { %2638 = vmatmul.mubr.f32.vlgmr.msra.gmra.mrb[14].mxu0 %v898_v26  ;;  %2681 = vmatprep.mubr.f32.mxu1 %v898_v26 }
 0xa79   :  { %3257 = vmatpush3.bf16.msra.mxu0 %v4105_v54  ;;  %2716 = vmatprep.mubr.msk.f32.mxu0 %vm3698_vm0, %v3699_v1 }
 0xa7a   :  { %3258 = vmatprep.subr.bf16.mxu0 %v3697_v0 }
 0xa7d   :  { %3260 = vmatpush3.bf16.msra.mxu0 %v4110_v58 }
 0xa7e   :  { %3261 = vmatprep.subr.bf16.mxu0 %v3697_v0 }
 0xa81   :  { %3263 = vmatpush3.bf16.msra.mxu0 %v4116_v15 }
 0xa82   :  { %3264 = vmatprep.subr.bf16.mxu0 %v3697_v0 }
 0xa85   :  { %3266 = vmatpush3.bf16.msra.mxu0 %v4124_v61 }
 0xa86   :  { %3267 = vmatprep.subr.bf16.mxu0 %v3697_v0 }
 0xa89   :  { %3269 = vmatpush3.bf16.msra.mxu0 %v4132_v3 }
 0xa8a   :  { %3270 = vmatprep.subr.bf16.mxu0 %v3697_v0 }
 0xa8d   :  { %3272 = vmatpush3.bf16.msra.mxu0 %v4138_v6 }
 0xa8e   :  { %3273 = vmatprep.subr.bf16.mxu0 %v3697_v0 }
 0xa91   :  { %3275 = vmatpush3.bf16.msra.mxu0 %v4142_v11 }
 0xa92   :  { %3276 = vmatprep.subr.bf16.mxu0 %v3697_v0 }
 0xa95   :  { %3278 = vmatpush3.bf16.msra.mxu0 %v4146_v16 }
 0xa96   :  { %3303 = vmatprep.subr.bf16.mxu0 %v3697_v0 }
 0xa98   :  { %2717 = vmatmul.mubr.f32.vlgmr.msra.gmra.mrb[16].mxu0 %v1156_v7 }
 0xa99   :  { %3305 = vmatpush3.bf16.msra.mxu0 %v4105_v54  ;;  %2786 = vmatprep.mubr.msk.f32.mxu0 %vm3698_vm0, %v3699_v1 }
 0xa9a   :  { %3306 = vmatprep.subr.bf16.mxu0 %v3697_v0 }
 0xa9d   :  { %3308 = vmatpush3.bf16.msra.mxu0 %v4110_v58 }
 0xa9e   :  { %3309 = vmatprep.subr.bf16.mxu0 %v3697_v0 }
 0xaa1   :  { %3311 = vmatpush3.bf16.msra.mxu0 %v4116_v15 }
 0xaa2   :  { %3312 = vmatprep.subr.bf16.mxu0 %v3697_v0 }
 0xaa5   :  { %3314 = vmatpush3.bf16.msra.mxu0 %v4124_v61 }
 0xaa6   :  { %3315 = vmatprep.subr.bf16.mxu0 %v3697_v0 }
 0xaa9   :  { %3317 = vmatpush3.bf16.msra.mxu0 %v4132_v3 }
 0xaaa   :  { %3318 = vmatprep.subr.bf16.mxu0 %v3697_v0 }
 0xaad   :  { %3320 = vmatpush3.bf16.msra.mxu0 %v4138_v6 }
 0xaae   :  { %3321 = vmatprep.subr.bf16.mxu0 %v3697_v0 }
 0xab1   :  { %3323 = vmatpush3.bf16.msra.mxu0 %v4142_v11 }
 0xab2   :  { %3324 = vmatprep.subr.bf16.mxu0 %v3697_v0 }
 0xab5   :  { %3326 = vmatpush3.bf16.msra.mxu0 %v4146_v16 }
 0xab6   :  { %3351 = vmatprep.subr.bf16.mxu0 %v3697_v0 }
 0xb4b   :  { %v969_v33 = vpop.f32.mrb[14].mxu0 }
 0xb4c   :  { %v973_v35 = vadd.f32 %v969_v33, %v237_v27  ;;  %v2639_v36 = vpop.f32.mrb[15].mxu0 }
 0xb4e   :  { %v974_v37 = vmul.f32 %v973_v35, %v3923_v63 }
 0xb50   :  { %3514 = vtanh.f32 %v974_v37 }
 0xb5a   :  { %v3515_v39 = vpop.eup %3514 }
 0xb5b   :  { %v976_v25 = vadd.f32 1.0, %v3515_v39 }
 0xb5d   :  { %v977_v41 = vmul.f32 0.5, %v976_v25 }
 0xb5f   :  { %v978_v42 = vsel %vm3916_vm3, %v3515_v39, %v977_v41  ;;  %v1102_v41 = vadd.f32 %v4200_v55, %v4126_v62 }
 0xb60   :  { %981 = vrot.lane.b32.xlu0 %v978_v42, %s3703_s22  ;;  %979 = vrot.lane.b32.xlu1 %v978_v42, %s3702_s30 }
 0xb6b   :  { %v1226_v43 = vpop.f32.mrb[16].mxu0 }
 0xb6c   :  { %v1230_v44 = vadd.f32 %v1226_v43, %v1092_v31  ;;  %v2718_v45 = vpop.f32.mrb[17].mxu0 }
 0xb6e   :  { %v1231_v47 = vmul.f32 %v1230_v44, %v3923_v63 }
 0xb70   :  { %3516 = vtanh.f32 %v1231_v47 }
 0xb7a   :  { %v3517_v48 = vpop.eup %3516 }
 0xb7b   :  { %v1233_v49 = vadd.f32 1.0, %v3517_v48 }
 0xb7d   :  { %v1234_v51 = vmul.f32 0.5, %v1233_v49 }
 0xb7f   :  { %v1235_v30 = vsel %vm3916_vm3, %v3517_v48, %v1234_v51 }
 0xb80   :  { %1238 = vrot.lane.b32.xlu0 %v1235_v30, %s3703_s22  ;;  %1236 = vrot.lane.b32.xlu1 %v1235_v30, %s3702_s30 }
 0xb84   :  { %1240 = vrot.lane.b32.xlu0 %v1235_v30, %s3701_s18  ;;  %983 = vrot.lane.b32.xlu1 %v978_v42, %s3701_s18 }
 0xbd2   :  { %v982_v52 = vpop.permute.xlu0 %981  ;;  %v980_v53 = vpop.permute.xlu1 %979 }
 0xbd3   :  { %v986_v12 = vmul.f32 %v982_v52, %v978_v42  ;;  %v985_v38 = vmul.f32 %v980_v53, %v4151_v22 }
 0xbd5   :  { %v987_v32 = vadd.f32 %v986_v12, %v985_v38 }
 0xbd7   :  { %3518 = vtanh.f32 %v987_v32 }
 0xbe1   :  { %v3519_v46 = vpop.eup %3518 }
 0xbf2   :  { %v1239_v59 = vpop.permute.xlu0 %1238  ;;  %v1237_v60 = vpop.permute.xlu1 %1236 }
 0xbf3   :  { %v1243_v21 = vmul.f32 %v1239_v59, %v1235_v30  ;;  %v1242_v28 = vmul.f32 %v1977_v56, %v1237_v60  ;;  %v1107_v56 = vadd.f32 %v4122_v40, %v4200_v55 }
 0xbf5   :  { %v1244_v34 = vadd.f32 %v1243_v21, %v1242_v28 }
 0xbf6   :  { %v984_v50 = vpop.permute.xlu1 %983  ;;  %v1241_v8 = vpop.permute.xlu0 %1240 }
 0xbf7   :  { %3520 = vtanh.f32 %v1244_v34  ;;  %v989_v4 = vmul.f32 %v3519_v46, %v984_v50 }
 0xbf9   :  { %2682 = vmatmul.mubr.f32.gmra.mrb[14].mxu1 %v989_v4 }
 0xbfa   :  { %2751 = vmatprep.mubr.msk.f32.mxu1 %vm3698_vm0, %v3699_v1 }
 0xc01   :  { %v3521_v5 = vpop.eup %3520 }
 0xc02   :  { %v1246_v10 = vmul.f32 %v3521_v5, %v1241_v8 }
 0xc04   :  { %2752 = vmatmul.mubr.f32.vlgmr.msra.gmra.mrb[16].mxu1 %v1246_v10 }
 0xc05   :  { %3329 = vmatpush3.bf16.msra.mxu1 %v4105_v54  ;;  %2821 = vmatprep.mubr.msk.f32.mxu1 %vm3698_vm0, %v3699_v1 }
 0xc06   :  { %3330 = vmatprep.subr.bf16.mxu1 %v3697_v0 }
 0xc09   :  { %3332 = vmatpush3.bf16.msra.mxu1 %v4110_v58 }
 0xc0a   :  { %3333 = vmatprep.subr.bf16.mxu1 %v3697_v0 }
 0xc0d   :  { %3335 = vmatpush3.bf16.msra.mxu1 %v4116_v15 }
 0xc0e   :  { %3336 = vmatprep.subr.bf16.mxu1 %v3697_v0 }
 0xc11   :  { %3338 = vmatpush3.bf16.msra.mxu1 %v4124_v61 }
 0xc12   :  { %3339 = vmatprep.subr.bf16.mxu1 %v3697_v0 }
 0xc15   :  { %3341 = vmatpush3.bf16.msra.mxu1 %v4132_v3 }
 0xc16   :  { %3342 = vmatprep.subr.bf16.mxu1 %v3697_v0 }
 0xc19   :  { %3344 = vmatpush3.bf16.msra.mxu1 %v4138_v6 }
 0xc1a   :  { %3345 = vmatprep.subr.bf16.mxu1 %v3697_v0 }
 0xc1d   :  { %3347 = vmatpush3.bf16.msra.mxu1 %v4142_v11 }
 0xc1e   :  { %3348 = vmatprep.subr.bf16.mxu1 %v3697_v0 }
 0xc21   :  { %3350 = vmatpush3.bf16.msra.mxu1 %v4146_v16 }
 0xc22   :  { %3375 = vmatprep.subr.bf16.mxu1 %v3697_v0 }
 0xccc   :  { %v4235_v13 = vpop.f32.mrb[14].mxu1 }
 0xccd   :  { %v4237_v14 = vpop.f32.mrb[15].mxu1 }
 0xcd7   :  { %v1314_v18 = vpop.f32.mrb[16].mxu1 }
 0xcd8   :  { %v1318_v19 = vadd.f32 %v1314_v18, %v1097_v17  ;;  %v2753_v20 = vpop.f32.mrb[17].mxu1 }
 0xcda   :  { %v1319_v22 = vmul.f32 %v1318_v19, %v3923_v63 }
 0xcdc   :  { %3522 = vtanh.f32 %v1319_v22  ;;  %v1112_v22 = vadd.f32 %v4200_v55, %v4134_v29 }
 0xce6   :  { %v3523_v23 = vpop.eup %3522 }
 0xce7   :  { %v1321_v24 = vadd.f32 1.0, %v3523_v23 }
 0xce9   :  { %v1322_v26 = vmul.f32 0.5, %v1321_v24 }
 0xceb   :  { %v1323_v7 = vsel %vm3916_vm3, %v3523_v23, %v1322_v26 }
 0xcec   :  { %1326 = vrot.lane.b32.xlu0 %v1323_v7, %s3703_s22  ;;  %1324 = vrot.lane.b32.xlu1 %v1323_v7, %s3702_s30 }
 0xcf0   :  { %1328 = vrot.lane.b32.xlu1 %v1323_v7, %s3701_s18 }
 0xd5e   :  { %v1327_v27 = vpop.permute.xlu0 %1326  ;;  %v1325_v9 = vpop.permute.xlu1 %1324 }
 0xd5f   :  { %v1331_v33 = vmul.f32 %v1327_v27, %v1323_v7  ;;  %v1330_v35 = vmul.f32 %v1325_v9, %v1244_v34 }
 0xd61   :  { %v1332_v36 = vadd.f32 %v1331_v33, %v1330_v35 }
 0xd62   :  { %v1329_v39 = vpop.permute.xlu1 %1328 }
 0xd63   :  { %3524 = vtanh.f32 %v1332_v36 }
 0xd6d   :  { %v3525_v37 = vpop.eup %3524 }
 0xd6e   :  { %v1334_v25 = vmul.f32 %v3525_v37, %v1329_v39 }
 0xd70   :  { %2787 = vmatmul.mubr.f32.vlgmr.msra.gmra.mrb[18].mxu0 %v1334_v25 }
 0xd71   :  { %3353 = vmatpush3.bf16.msra.mxu0 %v4105_v54  ;;  %2856 = vmatprep.mubr.msk.f32.mxu0 %vm3698_vm0, %v3699_v1 }
 0xd72   :  { %3354 = vmatprep.subr.bf16.mxu0 %v3697_v0 }
 0xd75   :  { %3356 = vmatpush3.bf16.msra.mxu0 %v4110_v58 }
 0xd76   :  { %3357 = vmatprep.subr.bf16.mxu0 %v3697_v0 }
 0xd79   :  { %3359 = vmatpush3.bf16.msra.mxu0 %v4116_v15 }
 0xd7a   :  { %3360 = vmatprep.subr.bf16.mxu0 %v3697_v0 }
 0xd7d   :  { %3362 = vmatpush3.bf16.msra.mxu0 %v4124_v61 }
 0xd7e   :  { %3363 = vmatprep.subr.bf16.mxu0 %v3697_v0 }
 0xd81   :  { %3365 = vmatpush3.bf16.msra.mxu0 %v4132_v3 }
 0xd82   :  { %3366 = vmatprep.subr.bf16.mxu0 %v3697_v0 }
 0xd85   :  { %3368 = vmatpush3.bf16.msra.mxu0 %v4138_v6 }
 0xd86   :  { %3369 = vmatprep.subr.bf16.mxu0 %v3697_v0 }
 0xd89   :  { %3371 = vmatpush3.bf16.msra.mxu0 %v4142_v11 }
 0xd8a   :  { %3372 = vmatprep.subr.bf16.mxu0 %v3697_v0 }
 0xd8d   :  { %3374 = vmatpush3.bf16.msra.mxu0 %v4146_v16 }
 0xd8e   :  { %3399 = vmatprep.subr.bf16.mxu0 %v3697_v0 }
 0xe43   :  { %v1402_v42 = vpop.f32.mrb[18].mxu0 }
 0xe44   :  { %v1406_v31 = vadd.f32 %v1402_v42, %v1102_v41  ;;  %v2788_v43 = vpop.f32.mrb[19].mxu0 }
 0xe46   :  { %v1407_v44 = vmul.f32 %v1406_v31, %v3923_v63 }
 0xe48   :  { %3526 = vtanh.f32 %v1407_v44 }
 0xe52   :  { %v3527_v45 = vpop.eup %3526 }
 0xe53   :  { %v1409_v47 = vadd.f32 1.0, %v3527_v45 }
 0xe55   :  { %v1410_v48 = vmul.f32 0.5, %v1409_v47 }
 0xe57   :  { %v1411_v49 = vsel %vm3916_vm3, %v3527_v45, %v1410_v48 }
 0xe58   :  { %1414 = vrot.lane.b32.xlu1 %v1411_v49, %s3703_s22  ;;  %1412 = vrot.lane.b32.xlu0 %v1411_v49, %s3702_s30 }
 0xe5c   :  { %1416 = vrot.lane.b32.xlu0 %v1411_v49, %s3701_s18 }
 0xeca   :  { %v1415_v51 = vpop.permute.xlu1 %1414  ;;  %v1413_v62 = vpop.permute.xlu0 %1412 }
 0xecb   :  { %v1419_v30 = vmul.f32 %v1415_v51, %v1411_v49  ;;  %v1418_v52 = vmul.f32 %v1413_v62, %v1332_v36 }
 0xecd   :  { %v1420_v53 = vadd.f32 %v1419_v30, %v1418_v52  ;;  %v1122_v30 = vadd.f32 %v4200_v55, %v4237_v14 }
 0xece   :  { %v1417_v38 = vpop.permute.xlu0 %1416 }
 0xecf   :  { %3528 = vtanh.f32 %v1420_v53 }
 0xed9   :  { %v3529_v12 = vpop.eup %3528 }
 0xeda   :  { %v1422_v32 = vmul.f32 %v3529_v12, %v1417_v38 }
 0xedc   :  { %2822 = vmatmul.mubr.f32.vlgmr.msra.gmra.mrb[18].mxu1 %v1422_v32 }
 0xedd   :  { %3377 = vmatpush3.bf16.msra.mxu1 %v4105_v54  ;;  %2891 = vmatprep.mubr.msk.f32.mxu1 %vm3698_vm0, %v3699_v1 }
 0xede   :  { %3378 = vmatprep.subr.bf16.mxu1 %v3697_v0 }
 0xee1   :  { %3380 = vmatpush3.bf16.msra.mxu1 %v4110_v58 }
 0xee2   :  { %3381 = vmatprep.subr.bf16.mxu1 %v3697_v0 }
 0xee5   :  { %3383 = vmatpush3.bf16.msra.mxu1 %v4116_v15 }
 0xee6   :  { %3384 = vmatprep.subr.bf16.mxu1 %v3697_v0 }
 0xee9   :  { %3386 = vmatpush3.bf16.msra.mxu1 %v4124_v61 }
 0xeea   :  { %3387 = vmatprep.subr.bf16.mxu1 %v3697_v0 }
 0xeed   :  { %3389 = vmatpush3.bf16.msra.mxu1 %v4132_v3 }
 0xeee   :  { %3390 = vmatprep.subr.bf16.mxu1 %v3697_v0 }
 0xef1   :  { %3392 = vmatpush3.bf16.msra.mxu1 %v4138_v6 }
 0xef2   :  { %3393 = vmatprep.subr.bf16.mxu1 %v3697_v0 }
 0xef5   :  { %3395 = vmatpush3.bf16.msra.mxu1 %v4142_v11 }
 0xef6   :  { %3396 = vmatprep.subr.bf16.mxu1 %v3697_v0 }
 0xef9   :  { %3398 = vmatpush3.bf16.msra.mxu1 %v4146_v16 }
 0xefa   :  { %3423 = vmatprep.subr.bf16.mxu1 %v3697_v0 }
 0xfaf   :  { %v1490_v59 = vpop.f32.mrb[18].mxu1 }
 0xfb0   :  { %v1494_v60 = vadd.f32 %v1490_v59, %v1107_v56  ;;  %v2823_v21 = vpop.f32.mrb[19].mxu1 }
 0xfb2   :  { %v1495_v28 = vmul.f32 %v1494_v60, %v3923_v63 }
 0xfb4   :  { %3530 = vtanh.f32 %v1495_v28 }
 0xfbe   :  { %v3531_v34 = vpop.eup %3530 }
 0xfbf   :  { %v1497_v46 = vadd.f32 1.0, %v3531_v34 }
 0xfc1   :  { %v1498_v50 = vmul.f32 0.5, %v1497_v46 }
 0xfc3   :  { %v1499_v4 = vsel %vm3916_vm3, %v3531_v34, %v1498_v50 }
 0xfc4   :  { %1502 = vrot.lane.b32.xlu0 %v1499_v4, %s3703_s22  ;;  %1500 = vrot.lane.b32.xlu1 %v1499_v4, %s3702_s30 }
 0xfc8   :  { %1504 = vrot.lane.b32.xlu1 %v1499_v4, %s3701_s18 }
0x1036   :  { %v1503_v5 = vpop.permute.xlu0 %1502  ;;  %v1501_v40 = vpop.permute.xlu1 %1500 }
0x1037   :  { %v1507_v8 = vmul.f32 %v1503_v5, %v1499_v4  ;;  %v1506_v10 = vmul.f32 %v1501_v40, %v1420_v53  ;;  %v1863_v5 = vld [vmem:[#allocation12] sm:$0xff]  ;;  %v1864_v40 = vld [vmem:[#allocation12 + $0x8] sm:$0xff] }
0x1039   :  { %v1508_v17 = vadd.f32 %v1507_v8, %v1506_v10  ;;  %v1865_v8 = vld [vmem:[#allocation12 + $0x10] sm:$0xff]  ;;  %v3448_v10 = vpack.c.bf16 %v1864_v40, %v1863_v5 }
0x103a   :  { %v1505_v19 = vpop.permute.xlu1 %1504 }
0x103b   :  { %3532 = vtanh.f32 %v1508_v17 }
0x1045   :  { %v3533_v18 = vpop.eup %3532 }
0x1046   :  { %v1510_v20 = vmul.f32 %v3533_v18, %v1505_v19  ;;  %v1867_v19 = vld [vmem:[#allocation12 + $0x20] sm:$0xff] }
0x1048   :  { %2857 = vmatmul.mubr.f32.vlgmr.msra.gmra.mrb[20].mxu0 %v1510_v20  ;;  %v1868_v20 = vld [vmem:[#allocation12 + $0x28] sm:$0xff] }
0x1049   :  { %3401 = vmatpush3.bf16.msra.mxu0 %v4105_v54  ;;  %2926 = vmatprep.mubr.msk.f32.mxu0 %vm3698_vm0, %v3699_v1 }
0x104a   :  { %3402 = vmatprep.subr.bf16.mxu0 %v3697_v0 }
0x104d   :  { %3404 = vmatpush3.bf16.msra.mxu0 %v4110_v58 }
0x104e   :  { %3405 = vmatprep.subr.bf16.mxu0 %v3697_v0 }
0x1051   :  { %3407 = vmatpush3.bf16.msra.mxu0 %v4116_v15 }
0x1052   :  { %3408 = vmatprep.subr.bf16.mxu0 %v3697_v0 }
0x1055   :  { %3410 = vmatpush3.bf16.msra.mxu0 %v4124_v61 }
0x1056   :  { %3411 = vmatprep.subr.bf16.mxu0 %v3697_v0 }
0x1059   :  { %3413 = vmatpush3.bf16.msra.mxu0 %v4132_v3 }
0x105a   :  { %3414 = vmatprep.subr.bf16.mxu0 %v3697_v0 }
0x105d   :  { %3416 = vmatpush3.bf16.msra.mxu0 %v4138_v6 }
0x105e   :  { %3417 = vmatprep.subr.bf16.mxu0 %v3697_v0 }
0x1061   :  { %3419 = vmatpush3.bf16.msra.mxu0 %v4142_v11 }
0x1062   :  { %3420 = vmatprep.subr.bf16.mxu0 %v3697_v0 }
0x1065   :  { %3422 = vmatpush3.bf16.msra.mxu0 %v4146_v16 }
0x1066   :  { %3447 = vmatprep.subr.bf16.mxu0 %v3697_v0 }
0x111b   :  { %v1578_v23 = vpop.f32.mrb[20].mxu0 }
0x111c   :  { %v1582_v24 = vadd.f32 %v1578_v23, %v1112_v22  ;;  %v2858_v26 = vpop.f32.mrb[21].mxu0  ;;  %v3454_v22 = vpack.c.bf16 %v1868_v20, %v1867_v19  ;;  %v1869_v23 = vld [vmem:[#allocation12 + $0x30] sm:$0xff] }
0x111e   :  { %v1583_v7 = vmul.f32 %v1582_v24, %v3923_v63  ;;  %v1870_v24 = vld [vmem:[#allocation12 + $0x38] sm:$0xff] }
0x111f   :  { %v3457_v26 = vpack.c.bf16 %v1870_v24, %v1869_v23 }
0x1120   :  { %3534 = vtanh.f32 %v1583_v7  ;;  %v1127_v7 = vadd.f32 %v4235_v13, %v4200_v55  ;;  %v1876_v13 = vld [vmem:[#allocation12 + $0x68] sm:$0xff] }
0x112a   :  { %v3535_v27 = vpop.eup %3534 }
0x112b   :  { %v1585_v9 = vadd.f32 1.0, %v3535_v27 }
0x112d   :  { %v1586_v33 = vmul.f32 0.5, %v1585_v9 }
0x112f   :  { %v1587_v35 = vsel %vm3916_vm3, %v3535_v27, %v1586_v33 }
0x1130   :  { %1590 = vrot.lane.b32.xlu1 %v1587_v35, %s3703_s22  ;;  %1588 = vrot.lane.b32.xlu0 %v1587_v35, %s3702_s30 }
0x1134   :  { %1592 = vrot.lane.b32.xlu0 %v1587_v35, %s3701_s18 }
0x11a2   :  { %v1591_v36 = vpop.permute.xlu1 %1590  ;;  %v1589_v29 = vpop.permute.xlu0 %1588 }
0x11a3   :  { %v1595_v37 = vmul.f32 %v1591_v36, %v1587_v35  ;;  %v1594_v39 = vmul.f32 %v1589_v29, %v1508_v17  ;;  %v1866_v17 = vld [vmem:[#allocation12 + $0x18] sm:$0xff]  ;;  %v1871_v36 = vld [vmem:[#allocation12 + $0x40] sm:$0xff]  ;;  %v1872_v29 = vld [vmem:[#allocation12 + $0x48] sm:$0xff] }
0x11a4   :  { %v3451_v18 = vpack.c.bf16 %v1866_v17, %v1865_v8 }
0x11a5   :  { %v1596_v25 = vadd.f32 %v1595_v37, %v1594_v39  ;;  %v3460_v37 = vpack.c.bf16 %v1872_v29, %v1871_v36  ;;  %v1873_v39 = vld [vmem:[#allocation12 + $0x50] sm:$0xff] }
0x11a6   :  { %v1593_v42 = vpop.permute.xlu0 %1592 }
0x11a7   :  { %3536 = vtanh.f32 %v1596_v25 }
0x11b1   :  { %v3537_v41 = vpop.eup %3536 }
0x11b2   :  { %v1598_v31 = vmul.f32 %v3537_v41, %v1593_v42 }
0x11b4   :  { %2892 = vmatmul.mubr.f32.vlgmr.msra.gmra.mrb[20].mxu1 %v1598_v31 }
0x11b5   :  { %3425 = vmatpush3.bf16.msra.mxu1 %v4105_v54  ;;  %2961 = vmatprep.mubr.msk.f32.mxu1 %vm3698_vm0, %v3699_v1  ;;  %v1117_v54 = vadd.f32 %v4130_v2, %v4200_v55  ;;  %v1875_v55 = vld [vmem:[#allocation12 + $0x60] sm:$0xff] }
0x11b6   :  { %3426 = vmatprep.subr.bf16.mxu1 %v3697_v0 }
0x11b9   :  { %3428 = vmatpush3.bf16.msra.mxu1 %v4110_v58 }
0x11ba   :  { %3429 = vmatprep.subr.bf16.mxu1 %v3697_v0 }
0x11bd   :  { %3431 = vmatpush3.bf16.msra.mxu1 %v4116_v15 }
0x11be   :  { %3432 = vmatprep.subr.bf16.mxu1 %v3697_v0 }
0x11c1   :  { %3434 = vmatpush3.bf16.msra.mxu1 %v4124_v61 }
0x11c2   :  { %3435 = vmatprep.subr.bf16.mxu1 %v3697_v0 }
0x11c5   :  { %3437 = vmatpush3.bf16.msra.mxu1 %v4132_v3 }
0x11c6   :  { %3438 = vmatprep.subr.bf16.mxu1 %v3697_v0 }
0x11c9   :  { %3440 = vmatpush3.bf16.msra.mxu1 %v4138_v6 }
0x11ca   :  { %3441 = vmatprep.subr.bf16.mxu1 %v3697_v0 }
0x11cd   :  { %3443 = vmatpush3.bf16.msra.mxu1 %v4142_v11 }
0x11ce   :  { %3444 = vmatprep.subr.bf16.mxu1 %v3697_v0 }
0x11d1   :  { %3446 = vmatpush3.bf16.msra.mxu1 %v4146_v16 }
0x1287   :  { %v1666_v58 = vpop.f32.mrb[20].mxu1 }
0x1288   :  { %v1670_v15 = vadd.f32 %v1666_v58, %v1117_v54  ;;  %v2893_v61 = vpop.f32.mrb[21].mxu1  ;;  %v3466_v54 = vpack.c.bf16 %v1876_v13, %v1875_v55 }
0x128a   :  { %v1671_v3 = vmul.f32 %v1670_v15, %v3923_v63  ;;  %v1878_v15 = vld [vmem:[#allocation12 + $0x78] sm:$0xff] }
0x128c   :  { %3538 = vtanh.f32 %v1671_v3 }
0x1296   :  { %v3539_v43 = vpop.eup %3538 }
0x1297   :  { %v1673_v44 = vadd.f32 1.0, %v3539_v43 }
0x1299   :  { %v1674_v6 = vmul.f32 0.5, %v1673_v44 }
0x129b   :  { %v1675_v45 = vsel %vm3916_vm3, %v3539_v43, %v1674_v6 }
0x129c   :  { %1678 = vrot.lane.b32.xlu0 %v1675_v45, %s3703_s22  ;;  %1676 = vrot.lane.b32.xlu1 %v1675_v45, %s3702_s30 }
0x12a0   :  { %1680 = vrot.lane.b32.xlu1 %v1675_v45, %s3701_s18 }
0x130e   :  { %v1679_v11 = vpop.permute.xlu0 %1678  ;;  %v1677_v2 = vpop.permute.xlu1 %1676 }
0x130f   :  { %v1683_v16 = vmul.f32 %v1679_v11, %v1675_v45  ;;  %v1682_v47 = vmul.f32 %v1677_v2, %v1596_v25  ;;  %v1874_v25 = vld [vmem:[#allocation12 + $0x58] sm:$0xff] }
0x1310   :  { %v3463_v41 = vpack.c.bf16 %v1874_v25, %v1873_v39 }
0x1311   :  { %v1684_v48 = vadd.f32 %v1683_v16, %v1682_v47 }
0x1312   :  { %v1681_v51 = vpop.permute.xlu1 %1680 }
0x1313   :  { %3540 = vtanh.f32 %v1684_v48 }
0x131d   :  { %v3541_v49 = vpop.eup %3540 }
0x131e   :  { %v1686_v62 = vmul.f32 %v3541_v49, %v1681_v51 }
0x1320   :  { %2927 = vmatmul.mubr.f32.vlgmr.msra.gmra.mrb[22].mxu0 %v1686_v62 }
0x1321   :  { %2996 = vmatprep.mubr.msk.f32.mxu0 %vm3698_vm0, %v3699_v1  ;;  %3449 = vmatpush3.bf16.msra.mxu0 %v3448_v10 }
0x1322   :  { %3450 = vmatprep.subr.bf16.mxu0 %v3697_v0 }
0x1325   :  { %3452 = vmatpush3.bf16.msra.mxu0 %v3451_v18 }
0x1326   :  { %3453 = vmatprep.subr.bf16.mxu0 %v3697_v0 }
0x1329   :  { %3455 = vmatpush3.bf16.msra.mxu0 %v3454_v22 }
0x132a   :  { %3456 = vmatprep.subr.bf16.mxu0 %v3697_v0 }
0x132d   :  { %3458 = vmatpush3.bf16.msra.mxu0 %v3457_v26 }
0x132e   :  { %3459 = vmatprep.subr.bf16.mxu0 %v3697_v0 }
0x1331   :  { %3461 = vmatpush3.bf16.msra.mxu0 %v3460_v37 }
0x1332   :  { %3462 = vmatprep.subr.bf16.mxu0 %v3697_v0 }
0x1335   :  { %3464 = vmatpush3.bf16.msra.mxu0 %v3463_v41 }
0x1336   :  { %3465 = vmatprep.subr.bf16.mxu0 %v3697_v0 }
0x1339   :  { %3467 = vmatpush3.bf16.msra.mxu0 %v3466_v54 }
0x133a   :  { %3468 = vmatprep.subr.bf16.mxu0 %v3697_v0 }
0x13f3   :  { %v1754_v52 = vpop.f32.mrb[22].mxu0 }
0x13f4   :  { %v1758_v53 = vadd.f32 %v1754_v52, %v1122_v30  ;;  %v2928_v12 = vpop.f32.mrb[23].mxu0 }
0x13f6   :  { %v1759_v38 = vmul.f32 %v1758_v53, %v3923_v63 }
0x13f8   :  { %3542 = vtanh.f32 %v1759_v38 }
0x1402   :  { %v3543_v32 = vpop.eup %3542 }
0x1403   :  { %v1761_v56 = vadd.f32 1.0, %v3543_v32 }
0x1405   :  { %v1762_v59 = vmul.f32 0.5, %v1761_v56 }
0x1407   :  { %v1763_v60 = vsel %vm3916_vm3, %v3543_v32, %v1762_v59 }
0x1408   :  { %1766 = vrot.lane.b32.xlu1 %v1763_v60, %s3703_s22  ;;  %1764 = vrot.lane.b32.xlu0 %v1763_v60, %s3702_s30 }
0x140c   :  { %1768 = vrot.lane.b32.xlu0 %v1763_v60, %s3701_s18 }
0x147a   :  { %v1767_v1 = vpop.permute.xlu1 %1766  ;;  %v1765_v14 = vpop.permute.xlu0 %1764 }
0x147b   :  { %v1771_v21 = vmul.f32 %v1767_v1, %v1763_v60  ;;  %v1770_v28 = vmul.f32 %v1765_v14, %v1684_v48 }
0x147d   :  { %v1772_v34 = vadd.f32 %v1771_v21, %v1770_v28 }
0x147e   :  { %v1769_v50 = vpop.permute.xlu0 %1768 }
0x147f   :  { %3544 = vtanh.f32 %v1772_v34 }
0x1489   :  { %v3545_v46 = vpop.eup %3544 }
0x148a   :  { %v1774_v4 = vmul.f32 %v3545_v46, %v1769_v50 }
0x148c   :  { %2962 = vmatmul.mubr.f32.vlgmr.msra.gmra.mrb[22].mxu1 %v1774_v4 }
0x155f   :  { %v1842_v27 = vpop.f32.mrb[22].mxu1 }
0x1560   :  { %v1846_v9 = vadd.f32 %v1842_v27, %v1127_v7  ;;  %v2963_v33 = vpop.f32.mrb[23].mxu1 }
0x1562   :  { %v1847_v35 = vmul.f32 %v1846_v9, %v3923_v63  ;;  %v1877_v63 = vld [vmem:[#allocation12 + $0x70] sm:$0xff] }
0x1563   :  { %v3469_v3 = vpack.c.bf16 %v1878_v15, %v1877_v63 }
0x1564   :  { %3546 = vtanh.f32 %v1847_v35 }
0x1565   :  { %3470 = vmatpush3.bf16.msra.mxu0 %v3469_v3 }
0x156e   :  { %v3547_v42 = vpop.eup %3546 }
0x156f   :  { %v1849_v31 = vadd.f32 1.0, %v3547_v42 }
0x1571   :  { %v1850_v58 = vmul.f32 0.5, %v1849_v31 }
0x1573   :  { %v1851_v61 = vsel %vm3916_vm3, %v3547_v42, %v1850_v58 }
0x1574   :  { %1854 = vrot.lane.b32.xlu0 %v1851_v61, %s3703_s22  ;;  %1852 = vrot.lane.b32.xlu1 %v1851_v61, %s3702_s30 }
0x1578   :  { %1856 = vrot.lane.b32.xlu1 %v1851_v61, %s3701_s18 }
0x15e6   :  { %v1855_v43 = vpop.permute.xlu0 %1854  ;;  %v1853_v44 = vpop.permute.xlu1 %1852 }
0x15e7   :  { %v1859_v6 = vmul.f32 %v1855_v43, %v1851_v61  ;;  %v1858_v45 = vmul.f32 %v1853_v44, %v1772_v34 }
0x15e9   :  { %v1860_v11 = vadd.f32 %v1859_v6, %v1858_v45 }
0x15ea   :  { %v1857_v2 = vpop.permute.xlu1 %1856 }
0x15eb   :  { %3548 = vtanh.f32 %v1860_v11 }
0x15f5   :  { %v3549_v0 = vpop.eup %3548 }
0x15f6   :  { %v1862_v16 = vmul.f32 %v3549_v0, %v1857_v2 }
0x15f8   :  { %2997 = vmatmul.mubr.f32.vlgmr.msra.gmra.mrb[24].mxu0 %v1862_v16 }
0x16cb   :  { %v1952_v47 = vpop.f32.mrb[24].mxu0 }
0x16cc   :  { %v1953_v48 = vadd.f32 %v1978_v57, %v1952_v47  ;;  %v2998_v49 = vpop.f32.mrb[25].mxu0 }
0x16ce   :  { %1956 = vst [vmem:[#allocation13] sm:$0xff] %v1953_v48 }
0x16cf   :  { %3671 = shalt.err (!%p3668_p2)
}
0x16d0   :  { %s3672_s11 = scalar_lea.hbm %s4398_s8, 128 }
0x16d1   :  { %p3673_p3 = scmp.ne.s32.totalorder %s4398_s8, %s3672_s11  ;;  %p3676_p4 = scmp.lt.u32.totalorder %s3672_s11, %s4398_s8 }
0x16d3   :  { %p3678_p5 = pnand %p3676_p4, %p3673_p3 }
0x16d5   :  { %3681 = shalt.err (!%p3678_p5)
}
0x16d6   :  { %1966 = dma.vmem_to_hbm [thread:$0]  %s1964_s28, 128, %s4398_s8, [#allocation6]  }
0x16d7   :  { %3688 = dma.done.wait [#allocation6], 128  }
0x16d8   :  { %3689 = vsyncadd [#allocation6], 4294967168 }
0x16d9   :  { %1970 = vsyncpa [#allocation5], 1 }
0x16da   :  { %1971 = vsyncpa [#allocation8], 1 }
0x16db   :  { %1972 = vsyncpa [#allocation11], 1 }
0x16dc   :  { %1973 = vsyncpa [#allocation6], 1 }

</bundles_post_ra>
